<compile_context>
chip_gen: v6e
topology: v6e:2x2x1
jax: 0.10.0
libtpu: 0.0.40
codegen_flags: <defaults>
</compile_context>

<pallas_src>
import functools

import jax
import jax.numpy as jnp
from jax import lax
from jax.experimental import pallas as pl
from jax.experimental.pallas import tpu as pltpu

LANES = 128  # TPU lane width; channels are padded to this end-to-end.


# ----------------------------------------------------------------------------
# helpers
# ----------------------------------------------------------------------------

def _round_up(x, m):
    return (x + m - 1) // m * m


def _pick_row_tile(m, pref=1024):
    """Row tile for the fused elementwise kernel: largest multiple of 8 that
    divides m (capped at pref); falls back to the full dim (always legal)."""
    cap = (min(pref, m) // 8) * 8
    for t in range(cap, 7, -8):
        if m % t == 0:
            return t
    return m


# ----------------------------------------------------------------------------
# Pallas kernel 1: fused conv (k x k, stride s) + per-sample BN stats epilogue
#
# Per grid step (one sample): the padded input image block lives in VMEM; the
# k*k taps are unrolled in Python, each a static (or stride-2) window read
# followed by a bf16 MXU matmul accumulated in f32.  The epilogue writes the
# bf16 conv output once and the per-sample [sum, sumsq] channel statistics
# (used for training-mode BN and for the SE average pool) from the f32
# accumulator -- no separate reduction pass over the conv output in HBM.
# ----------------------------------------------------------------------------

def _conv_stats_kernel(x_ref, w_ref, o_ref, st_ref, *, ks, stride, Ho, Wo):
    acc = None
    for dy in range(ks):
        for dx in range(ks):
            if stride == 1:
                a = x_ref[dy:dy + Ho, dx:dx + Wo, :]
            else:
                a = x_ref[pl.ds(dy, Ho, stride=stride),
                          pl.ds(dx, Wo, stride=stride), :]
            a2 = a.reshape(Ho * Wo, a.shape[-1]).astype(jnp.bfloat16)
            contrib = jnp.dot(a2, w_ref[dy, dx, :, :],
                              preferred_element_type=jnp.float32)
            acc = contrib if acc is None else acc + contrib
    o_ref[...] = acc.astype(o_ref.dtype)
    # Stats from the f32 accumulator (avoids bf16 E[x^2]-E[x]^2 cancellation).
    st_ref[0:1, :] = jnp.sum(acc, axis=0, keepdims=True)
    st_ref[1:2, :] = jnp.sum(acc * acc, axis=0, keepdims=True)


def conv2d_with_stats(xp, w4, Ho, Wo, *, ks, stride):
    """xp: (N, Hin, Win, Cinp) f32 (spatially pre-padded for ks=3, channels
    padded to 128).  w4: (ks, ks, Cinp, Coutp) bf16.
    Returns (out, stats): out (N, Ho*Wo, Coutp) bf16, stats (N, 2, Coutp) f32."""
    N, Hin, Win, Cinp = xp.shape
    Coutp = w4.shape[-1]
    kern = functools.partial(_conv_stats_kernel, ks=ks, stride=stride,
                             Ho=Ho, Wo=Wo)
    out, stats = pl.pallas_call(
        kern,
        out_shape=(jax.ShapeDtypeStruct((N, Ho * Wo, Coutp), jnp.bfloat16),
                   jax.ShapeDtypeStruct((N, 2, Coutp), jnp.float32)),
        grid_spec=pltpu.PrefetchScalarGridSpec(
            num_scalar_prefetch=0,
            grid=(N,),
            in_specs=[
                # Whole padded image per sample stays resident in VMEM; the 9
                # taps re-read it from VMEM, not HBM (single HBM read/sample).
                pl.BlockSpec((None, Hin, Win, Cinp), lambda n: (n, 0, 0, 0)),
                pl.BlockSpec((ks, ks, Cinp, Coutp), lambda n: (0, 0, 0, 0)),
            ],
            out_specs=[
                pl.BlockSpec((None, Ho * Wo, Coutp), lambda n: (n, 0, 0)),
                pl.BlockSpec((None, 2, Coutp), lambda n: (n, 0, 0)),
            ]),
        compiler_params=pltpu.CompilerParams(
            dimension_semantics=("parallel",)),
    )(xp, w4)
    return out, stats


# ----------------------------------------------------------------------------
# Pallas kernel 2: fused (BN2*SE) apply + downsample-BN apply + residual + ReLU
# ----------------------------------------------------------------------------

def _bn_se_add_relu_kernel(x_ref, id_ref, cs_ref, cb_ref, sd_ref, bd_ref, o_ref):
    out = x_ref[...].astype(jnp.float32) * cs_ref[...] + cb_ref[...]
    ident = id_ref[...].astype(jnp.float32) * sd_ref[...] + bd_ref[...]
    o_ref[...] = jnp.maximum(out + ident, 0.0)


def fused_bn_se_residual_relu(out3d, id3d, cs, cb, sd, bd):
    """One HBM pass: relu(se*bn2(out) + bn_d(identity)).
    out3d/id3d: (N,HW,Cp) bf16; cs/cb: (N,1,Cp) f32 (= se*s2, se*b2);
    sd/bd: (1,1,Cp) f32."""
    N, HW, Cp = out3d.shape
    th = _pick_row_tile(HW)
    return pl.pallas_call(
        _bn_se_add_relu_kernel,
        out_shape=jax.ShapeDtypeStruct((N, HW, Cp), jnp.float32),
        grid_spec=pltpu.PrefetchScalarGridSpec(
            num_scalar_prefetch=0,
            grid=(N, HW // th),
            in_specs=[
                pl.BlockSpec((1, th, Cp), lambda n, t: (n, t, 0)),
                pl.BlockSpec((1, th, Cp), lambda n, t: (n, t, 0)),
                pl.BlockSpec((1, 1, Cp), lambda n, t: (n, 0, 0)),
                pl.BlockSpec((1, 1, Cp), lambda n, t: (n, 0, 0)),
                pl.BlockSpec((1, 1, Cp), lambda n, t: (0, 0, 0)),
                pl.BlockSpec((1, 1, Cp), lambda n, t: (0, 0, 0)),
            ],
            out_specs=pl.BlockSpec((1, th, Cp), lambda n, t: (n, t, 0))),
        compiler_params=pltpu.CompilerParams(
            dimension_semantics=("parallel", "parallel")),
    )(out3d, id3d, cs, cb, sd, bd)


# ----------------------------------------------------------------------------
# Glue (plain JAX: tiny per-channel math, SE FCs, layout/padding passes)
# ----------------------------------------------------------------------------

def bn_from_stats(stats, count, eps=1e-5):
    """Training-mode BN (biased batch var, gamma=1, beta=0) from (N,2,Cp) stats."""
    tot = jnp.sum(stats, axis=0)                  # (2, Cp)
    mean = tot[0] / count
    var = jnp.maximum(tot[1] / count - mean * mean, 0.0)
    scale = lax.rsqrt(var + eps)
    return scale, -mean * scale


def _prep_conv_w(w, cin_p, cout_p):
    """PyTorch OIHW (Cout,Cin,k,k) -> (k,k,Cin_p,Cout_p) bf16, zero-padded."""
    cout, cin, kh, kw = w.shape
    wt = jnp.transpose(w, (2, 3, 1, 0))
    wt = jnp.pad(wt, ((0, 0), (0, 0), (0, cin_p - cin), (0, cout_p - cout)))
    return wt.astype(jnp.bfloat16)


def basic_block_forward(params, x_nchw, stride):
    N, Cin, H, W = x_nchw.shape
    w1 = params['conv1_w']
    planes = w1.shape[0]
    Cinp = _round_up(Cin, LANES)                   # lane-pad input channels
    Cp = _round_up(planes, LANES)                  # lane-pad planes

    # NCHW -> NHWC, lane-pad channels (one fused XLA pass).
    x = jnp.transpose(x_nchw, (0, 2, 3, 1)).astype(jnp.float32)
    x = jnp.pad(x, ((0, 0), (0, 0), (0, 0), (0, Cinp - Cin)))

    # ---- conv1 (3x3, stride) + BN1 stats in the same Pallas kernel ----------
    Ho = (H + 2 - 3) // stride + 1
    Wo = (W + 2 - 3) // stride + 1
    HW = Ho * Wo
    xp1 = jnp.pad(x, ((0, 0), (1, 1), (1, 1), (0, 0)))
    w1p = _prep_conv_w(w1, Cinp, Cp)
    out1, st1 = conv2d_with_stats(xp1, w1p, Ho, Wo, ks=3, stride=stride)
    s1, b1 = bn_from_stats(st1, N * HW)

    # BN1-apply + ReLU + spatial pad: plain jnp so XLA fuses it into the single
    # producer pass of conv2's input (no standalone Pallas elementwise pass).
    act1 = jnp.maximum(out1.reshape(N, Ho, Wo, Cp).astype(jnp.float32) * s1 + b1,
                       0.0)
    xp2 = jnp.pad(act1, ((0, 0), (1, 1), (1, 1), (0, 0)))

    # ---- conv2 (3x3, stride 1) + BN2 stats (also feed the SE pool) ----------
    w2p = _prep_conv_w(params['conv2_w'], Cp, Cp)
    out2, st2 = conv2d_with_stats(xp2, w2p, Ho, Wo, ks=3, stride=1)
    s2, b2 = bn_from_stats(st2, N * HW)

    # ---- SE: pool derived analytically from the conv2 epilogue stats --------
    pool = st2[:, 0, :] / HW                       # per-sample mean of conv2 out
    se_in = pool * s2[None, :] + b2[None, :]       # == mean_{H,W} bn2(out)
    se_w1p = jnp.pad(params['se_w1'], ((0, Cp - planes), (0, 0)))
    se_w2p = jnp.pad(params['se_w2'], ((0, 0), (0, Cp - planes)))
    # Tiny FCs stay in plain JAX per the perf review (far below one MXU tile).
    h = jnp.maximum(jnp.dot(se_in, se_w1p), 0.0)
    se = jax.nn.sigmoid(jnp.dot(h, se_w2p))        # (N, Cp)
    cs = (s2[None, :] * se).reshape(N, 1, Cp)      # combined per-(n,c) scale
    cb = (b2[None, :] * se).reshape(N, 1, Cp)      # combined per-(n,c) bias

    # ---- identity / downsample branch ---------------------------------------
    if 'down_w' in params:
        xs = x[:, ::stride, ::stride, :]           # 1x1-conv stride subsample
        wdp = _prep_conv_w(params['down_w'], Cinp, Cp)
        idb, std = conv2d_with_stats(xs, wdp, Ho, Wo, ks=1, stride=1)
        sd, bd = bn_from_stats(std, N * HW)
    else:
        assert Cin == planes and stride == 1, (
            "identity path requires inplanes == planes and stride == 1")
        idb = x.reshape(N, HW, Cp).astype(jnp.bfloat16)
        sd = jnp.ones((Cp,), jnp.float32)
        bd = jnp.zeros((Cp,), jnp.float32)

    # ---- fused: relu(se*bn2(out) + bn_d(identity)) -- single HBM pass -------
    y = fused_bn_se_residual_relu(out2, idb, cs, cb,
                                  sd.reshape(1, 1, Cp), bd.reshape(1, 1, Cp))
    y = y.reshape(N, Ho, Wo, Cp)[:, :, :, :planes]  # un-pad channels at the end
    return jnp.transpose(y, (0, 3, 1, 2))           # NHWC -> NCHW


# ----------------------------------------------------------------------------
# Parameter construction (deterministic, in-script)
# ----------------------------------------------------------------------------

def make_params(key, inplanes, planes, stride, reduction=16):
    ks = jax.random.split(key, 8)

    def conv_w(k, cout, cin, ksz):
        std = (2.0 / (cout * ksz * ksz)) ** 0.5     # kaiming_normal_, fan_out
        return std * jax.random.normal(k, (cout, cin, ksz, ksz), jnp.float32)

    def lin_w(k, cin, cout):                        # nn.Linear(bias=False)
        bound = 1.0 / (cin ** 0.5)
        return jax.random.uniform(k, (cin, cout), jnp.float32, -bound, bound)

    P = {
        'conv1_w': conv_w(ks[0], planes, inplanes, 3),
        'conv2_w': conv_w(ks[1], planes, planes, 3),
        'se_w1': lin_w(ks[2], planes, planes // reduction),
        'se_w2': lin_w(ks[3], planes // reduction, planes),
    }
    if stride != 1 or inplanes != planes:
        P['down_w'] = conv_w(ks[4], planes, inplanes, 1)  # downsample conv1x1+BN
    return P


# ----------------------------------------------------------------------------
# Driver
# ----------------------------------------------------------------------------

if __name__ == "__main__":
    key = jax.random.PRNGKey(0)
    inplanes, planes, stride = 32, 64, 2       # exercises the downsample branch
    params = make_params(key, inplanes, planes, stride)
    x = jax.random.normal(jax.random.fold_in(key, 1),
                          (2, inplanes, 16, 16), jnp.float32)

    fwd = jax.jit(functools.partial(basic_block_forward, stride=stride))
    out = jax.block_until_ready(fwd(params, x))

    assert out.shape == (2, planes, 8, 8), out.shape
    assert bool(jnp.all(jnp.isfinite(out)))
    print("KERNEL_OK")
</pallas_src>

<mosaic_0001>
module attributes {stable_mosaic.version = 11 : i64} {
  func.func @_conv_stats_kernel(%arg0: i32, %arg1: memref<1x18x18x128xf32, #tpu.memory_space<vmem>>, %arg2: memref<3x3x128x128xbf16, #tpu.memory_space<vmem>>, %arg3: memref<1x64x128xbf16, #tpu.memory_space<vmem>>, %arg4: memref<1x2x128xf32, #tpu.memory_space<vmem>>) attributes {dimension_semantics = [#tpu.dimension_semantics<parallel>], iteration_bounds = array<i64: 2>, scalar_prefetch = 0 : i64, scratch_operands = 0 : i64, tpu.core_type = #tpu.core_type<tc>, window_params = [{transform_indices = @transform_0, window_bounds = array<i64: 1, 18, 18, 128>}, {pipeline_mode = #tpu.pipeline_mode<synchronous>, transform_indices = @transform_1, window_bounds = array<i64: 3, 3, 128, 128>}, {transform_indices = @transform_2, window_bounds = array<i64: 1, 64, 128>}, {transform_indices = @transform_3, window_bounds = array<i64: 1, 2, 128>}]} {
    %c0 = arith.constant 0 : index
    %c0_0 = arith.constant 0 : index
    %c0_1 = arith.constant 0 : index
    %c0_2 = arith.constant 0 : index
    %0 = tpu.strided_load %arg1[%c0, %c0_0, %c0_1, %c0_2] {strides = array<i32: 1, 2, 2, 1>} : memref<1x18x18x128xf32, #tpu.memory_space<vmem>>, vector<1x8x8x128xf32>
    %1 = vector.shape_cast %0 : vector<1x8x8x128xf32> to vector<8x8x128xf32>
    %2 = vector.shape_cast %1 : vector<8x8x128xf32> to vector<64x128xf32>
    %3 = arith.truncf %2 : vector<64x128xf32> to vector<64x128xbf16>
    %c0_3 = arith.constant 0 : index
    %c0_4 = arith.constant 0 : index
    %c0_5 = arith.constant 0 : index
    %c0_6 = arith.constant 0 : index
    %4 = vector.load %arg2[%c0_3, %c0_4, %c0_5, %c0_6] : memref<3x3x128x128xbf16, #tpu.memory_space<vmem>>, vector<1x1x128x128xbf16>
    %5 = vector.shape_cast %4 : vector<1x1x128x128xbf16> to vector<128x128xbf16>
    %cst = arith.constant dense<0.000000e+00> : vector<64x128xf32>
    %6 = tpu.matmul %3, %5, %cst {dimension_numbers = #tpu.dot_dimension_numbers<[1], [0], [0], [1], [0, 0, 1, 1], [], []>} : vector<64x128xbf16>, vector<128x128xbf16>, vector<64x128xf32> -> vector<64x128xf32>
    %c0_7 = arith.constant 0 : index
    %c0_8 = arith.constant 0 : index
    %c1 = arith.constant 1 : index
    %c0_9 = arith.constant 0 : index
    %7 = tpu.strided_load %arg1[%c0_7, %c0_8, %c1, %c0_9] {strides = array<i32: 1, 2, 2, 1>} : memref<1x18x18x128xf32, #tpu.memory_space<vmem>>, vector<1x8x8x128xf32>
    %8 = vector.shape_cast %7 : vector<1x8x8x128xf32> to vector<8x8x128xf32>
    %9 = vector.shape_cast %8 : vector<8x8x128xf32> to vector<64x128xf32>
    %10 = arith.truncf %9 : vector<64x128xf32> to vector<64x128xbf16>
    %c0_10 = arith.constant 0 : index
    %c1_11 = arith.constant 1 : index
    %c0_12 = arith.constant 0 : index
    %c0_13 = arith.constant 0 : index
    %11 = vector.load %arg2[%c0_10, %c1_11, %c0_12, %c0_13] : memref<3x3x128x128xbf16, #tpu.memory_space<vmem>>, vector<1x1x128x128xbf16>
    %12 = vector.shape_cast %11 : vector<1x1x128x128xbf16> to vector<128x128xbf16>
    %cst_14 = arith.constant dense<0.000000e+00> : vector<64x128xf32>
    %13 = tpu.matmul %10, %12, %cst_14 {dimension_numbers = #tpu.dot_dimension_numbers<[1], [0], [0], [1], [0, 0, 1, 1], [], []>} : vector<64x128xbf16>, vector<128x128xbf16>, vector<64x128xf32> -> vector<64x128xf32>
    %14 = arith.addf %6, %13 : vector<64x128xf32>
    %c0_15 = arith.constant 0 : index
    %c0_16 = arith.constant 0 : index
    %c2 = arith.constant 2 : index
    %c0_17 = arith.constant 0 : index
    %15 = tpu.strided_load %arg1[%c0_15, %c0_16, %c2, %c0_17] {strides = array<i32: 1, 2, 2, 1>} : memref<1x18x18x128xf32, #tpu.memory_space<vmem>>, vector<1x8x8x128xf32>
    %16 = vector.shape_cast %15 : vector<1x8x8x128xf32> to vector<8x8x128xf32>
    %17 = vector.shape_cast %16 : vector<8x8x128xf32> to vector<64x128xf32>
    %18 = arith.truncf %17 : vector<64x128xf32> to vector<64x128xbf16>
    %c0_18 = arith.constant 0 : index
    %c2_19 = arith.constant 2 : index
    %c0_20 = arith.constant 0 : index
    %c0_21 = arith.constant 0 : index
    %19 = vector.load %arg2[%c0_18, %c2_19, %c0_20, %c0_21] : memref<3x3x128x128xbf16, #tpu.memory_space<vmem>>, vector<1x1x128x128xbf16>
    %20 = vector.shape_cast %19 : vector<1x1x128x128xbf16> to vector<128x128xbf16>
    %cst_22 = arith.constant dense<0.000000e+00> : vector<64x128xf32>
    %21 = tpu.matmul %18, %20, %cst_22 {dimension_numbers = #tpu.dot_dimension_numbers<[1], [0], [0], [1], [0, 0, 1, 1], [], []>} : vector<64x128xbf16>, vector<128x128xbf16>, vector<64x128xf32> -> vector<64x128xf32>
    %22 = arith.addf %14, %21 : vector<64x128xf32>
    %c0_23 = arith.constant 0 : index
    %c1_24 = arith.constant 1 : index
    %c0_25 = arith.constant 0 : index
    %c0_26 = arith.constant 0 : index
    %23 = tpu.strided_load %arg1[%c0_23, %c1_24, %c0_25, %c0_26] {strides = array<i32: 1, 2, 2, 1>} : memref<1x18x18x128xf32, #tpu.memory_space<vmem>>, vector<1x8x8x128xf32>
    %24 = vector.shape_cast %23 : vector<1x8x8x128xf32> to vector<8x8x128xf32>
    %25 = vector.shape_cast %24 : vector<8x8x128xf32> to vector<64x128xf32>
    %26 = arith.truncf %25 : vector<64x128xf32> to vector<64x128xbf16>
    %c1_27 = arith.constant 1 : index
    %c0_28 = arith.constant 0 : index
    %c0_29 = arith.constant 0 : index
    %c0_30 = arith.constant 0 : index
    %27 = vector.load %arg2[%c1_27, %c0_28, %c0_29, %c0_30] : memref<3x3x128x128xbf16, #tpu.memory_space<vmem>>, vector<1x1x128x128xbf16>
    %28 = vector.shape_cast %27 : vector<1x1x128x128xbf16> to vector<128x128xbf16>
    %cst_31 = arith.constant dense<0.000000e+00> : vector<64x128xf32>
    %29 = tpu.matmul %26, %28, %cst_31 {dimension_numbers = #tpu.dot_dimension_numbers<[1], [0], [0], [1], [0, 0, 1, 1], [], []>} : vector<64x128xbf16>, vector<128x128xbf16>, vector<64x128xf32> -> vector<64x128xf32>
    %30 = arith.addf %22, %29 : vector<64x128xf32>
    %c0_32 = arith.constant 0 : index
    %c1_33 = arith.constant 1 : index
    %c1_34 = arith.constant 1 : index
    %c0_35 = arith.constant 0 : index
    %31 = tpu.strided_load %arg1[%c0_32, %c1_33, %c1_34, %c0_35] {strides = array<i32: 1, 2, 2, 1>} : memref<1x18x18x128xf32, #tpu.memory_space<vmem>>, vector<1x8x8x128xf32>
    %32 = vector.shape_cast %31 : vector<1x8x8x128xf32> to vector<8x8x128xf32>
    %33 = vector.shape_cast %32 : vector<8x8x128xf32> to vector<64x128xf32>
    %34 = arith.truncf %33 : vector<64x128xf32> to vector<64x128xbf16>
    %c1_36 = arith.constant 1 : index
    %c1_37 = arith.constant 1 : index
    %c0_38 = arith.constant 0 : index
    %c0_39 = arith.constant 0 : index
    %35 = vector.load %arg2[%c1_36, %c1_37, %c0_38, %c0_39] : memref<3x3x128x128xbf16, #tpu.memory_space<vmem>>, vector<1x1x128x128xbf16>
    %36 = vector.shape_cast %35 : vector<1x1x128x128xbf16> to vector<128x128xbf16>
    %cst_40 = arith.constant dense<0.000000e+00> : vector<64x128xf32>
    %37 = tpu.matmul %34, %36, %cst_40 {dimension_numbers = #tpu.dot_dimension_numbers<[1], [0], [0], [1], [0, 0, 1, 1], [], []>} : vector<64x128xbf16>, vector<128x128xbf16>, vector<64x128xf32> -> vector<64x128xf32>
    %38 = arith.addf %30, %37 : vector<64x128xf32>
    %c0_41 = arith.constant 0 : index
    %c1_42 = arith.constant 1 : index
    %c2_43 = arith.constant 2 : index
    %c0_44 = arith.constant 0 : index
    %39 = tpu.strided_load %arg1[%c0_41, %c1_42, %c2_43, %c0_44] {strides = array<i32: 1, 2, 2, 1>} : memref<1x18x18x128xf32, #tpu.memory_space<vmem>>, vector<1x8x8x128xf32>
    %40 = vector.shape_cast %39 : vector<1x8x8x128xf32> to vector<8x8x128xf32>
    %41 = vector.shape_cast %40 : vector<8x8x128xf32> to vector<64x128xf32>
    %42 = arith.truncf %41 : vector<64x128xf32> to vector<64x128xbf16>
    %c1_45 = arith.constant 1 : index
    %c2_46 = arith.constant 2 : index
    %c0_47 = arith.constant 0 : index
    %c0_48 = arith.constant 0 : index
    %43 = vector.load %arg2[%c1_45, %c2_46, %c0_47, %c0_48] : memref<3x3x128x128xbf16, #tpu.memory_space<vmem>>, vector<1x1x128x128xbf16>
    %44 = vector.shape_cast %43 : vector<1x1x128x128xbf16> to vector<128x128xbf16>
    %cst_49 = arith.constant dense<0.000000e+00> : vector<64x128xf32>
    %45 = tpu.matmul %42, %44, %cst_49 {dimension_numbers = #tpu.dot_dimension_numbers<[1], [0], [0], [1], [0, 0, 1, 1], [], []>} : vector<64x128xbf16>, vector<128x128xbf16>, vector<64x128xf32> -> vector<64x128xf32>
    %46 = arith.addf %38, %45 : vector<64x128xf32>
    %c0_50 = arith.constant 0 : index
    %c2_51 = arith.constant 2 : index
    %c0_52 = arith.constant 0 : index
    %c0_53 = arith.constant 0 : index
    %47 = tpu.strided_load %arg1[%c0_50, %c2_51, %c0_52, %c0_53] {strides = array<i32: 1, 2, 2, 1>} : memref<1x18x18x128xf32, #tpu.memory_space<vmem>>, vector<1x8x8x128xf32>
    %48 = vector.shape_cast %47 : vector<1x8x8x128xf32> to vector<8x8x128xf32>
    %49 = vector.shape_cast %48 : vector<8x8x128xf32> to vector<64x128xf32>
    %50 = arith.truncf %49 : vector<64x128xf32> to vector<64x128xbf16>
    %c2_54 = arith.constant 2 : index
    %c0_55 = arith.constant 0 : index
    %c0_56 = arith.constant 0 : index
    %c0_57 = arith.constant 0 : index
    %51 = vector.load %arg2[%c2_54, %c0_55, %c0_56, %c0_57] : memref<3x3x128x128xbf16, #tpu.memory_space<vmem>>, vector<1x1x128x128xbf16>
    %52 = vector.shape_cast %51 : vector<1x1x128x128xbf16> to vector<128x128xbf16>
    %cst_58 = arith.constant dense<0.000000e+00> : vector<64x128xf32>
    %53 = tpu.matmul %50, %52, %cst_58 {dimension_numbers = #tpu.dot_dimension_numbers<[1], [0], [0], [1], [0, 0, 1, 1], [], []>} : vector<64x128xbf16>, vector<128x128xbf16>, vector<64x128xf32> -> vector<64x128xf32>
    %54 = arith.addf %46, %53 : vector<64x128xf32>
    %c0_59 = arith.constant 0 : index
    %c2_60 = arith.constant 2 : index
    %c1_61 = arith.constant 1 : index
    %c0_62 = arith.constant 0 : index
    %55 = tpu.strided_load %arg1[%c0_59, %c2_60, %c1_61, %c0_62] {strides = array<i32: 1, 2, 2, 1>} : memref<1x18x18x128xf32, #tpu.memory_space<vmem>>, vector<1x8x8x128xf32>
    %56 = vector.shape_cast %55 : vector<1x8x8x128xf32> to vector<8x8x128xf32>
    %57 = vector.shape_cast %56 : vector<8x8x128xf32> to vector<64x128xf32>
    %58 = arith.truncf %57 : vector<64x128xf32> to vector<64x128xbf16>
    %c2_63 = arith.constant 2 : index
    %c1_64 = arith.constant 1 : index
    %c0_65 = arith.constant 0 : index
    %c0_66 = arith.constant 0 : index
    %59 = vector.load %arg2[%c2_63, %c1_64, %c0_65, %c0_66] : memref<3x3x128x128xbf16, #tpu.memory_space<vmem>>, vector<1x1x128x128xbf16>
    %60 = vector.shape_cast %59 : vector<1x1x128x128xbf16> to vector<128x128xbf16>
    %cst_67 = arith.constant dense<0.000000e+00> : vector<64x128xf32>
    %61 = tpu.matmul %58, %60, %cst_67 {dimension_numbers = #tpu.dot_dimension_numbers<[1], [0], [0], [1], [0, 0, 1, 1], [], []>} : vector<64x128xbf16>, vector<128x128xbf16>, vector<64x128xf32> -> vector<64x128xf32>
    %62 = arith.addf %54, %61 : vector<64x128xf32>
    %c0_68 = arith.constant 0 : index
    %c2_69 = arith.constant 2 : index
    %c2_70 = arith.constant 2 : index
    %c0_71 = arith.constant 0 : index
    %63 = tpu.strided_load %arg1[%c0_68, %c2_69, %c2_70, %c0_71] {strides = array<i32: 1, 2, 2, 1>} : memref<1x18x18x128xf32, #tpu.memory_space<vmem>>, vector<1x8x8x128xf32>
    %64 = vector.shape_cast %63 : vector<1x8x8x128xf32> to vector<8x8x128xf32>
    %65 = vector.shape_cast %64 : vector<8x8x128xf32> to vector<64x128xf32>
    %66 = arith.truncf %65 : vector<64x128xf32> to vector<64x128xbf16>
    %c2_72 = arith.constant 2 : index
    %c2_73 = arith.constant 2 : index
    %c0_74 = arith.constant 0 : index
    %c0_75 = arith.constant 0 : index
    %67 = vector.load %arg2[%c2_72, %c2_73, %c0_74, %c0_75] : memref<3x3x128x128xbf16, #tpu.memory_space<vmem>>, vector<1x1x128x128xbf16>
    %68 = vector.shape_cast %67 : vector<1x1x128x128xbf16> to vector<128x128xbf16>
    %cst_76 = arith.constant dense<0.000000e+00> : vector<64x128xf32>
    %69 = tpu.matmul %66, %68, %cst_76 {dimension_numbers = #tpu.dot_dimension_numbers<[1], [0], [0], [1], [0, 0, 1, 1], [], []>} : vector<64x128xbf16>, vector<128x128xbf16>, vector<64x128xf32> -> vector<64x128xf32>
    %70 = arith.addf %62, %69 : vector<64x128xf32>
    %71 = arith.truncf %70 : vector<64x128xf32> to vector<64x128xbf16>
    %c0_77 = arith.constant 0 : index
    %c0_78 = arith.constant 0 : index
    %c0_79 = arith.constant 0 : index
    %72 = vector.load %arg3[%c0_77, %c0_78, %c0_79] : memref<1x64x128xbf16, #tpu.memory_space<vmem>>, vector<1x64x128xbf16>
    %73 = vector.shape_cast %72 : vector<1x64x128xbf16> to vector<64x128xbf16>
    %74 = vector.shape_cast %71 : vector<64x128xbf16> to vector<1x64x128xbf16>
    tpu.vector_store %arg3[%c0_77, %c0_78, %c0_79], %74 {strides = array<i32>} : memref<1x64x128xbf16, #tpu.memory_space<vmem>>, vector<1x64x128xbf16>,
    %cst_80 = arith.constant dense<0.000000e+00> : vector<128xf32>
    %75 = vector.multi_reduction <add>, %70, %cst_80 [0] : vector<64x128xf32> to vector<128xf32>
    %76 = vector.shape_cast %75 : vector<128xf32> to vector<1x128xf32>
    %c0_81 = arith.constant 0 : index
    %c0_82 = arith.constant 0 : index
    %c0_83 = arith.constant 0 : index
    %77 = vector.load %arg4[%c0_81, %c0_82, %c0_83] : memref<1x2x128xf32, #tpu.memory_space<vmem>>, vector<1x1x128xf32>
    %78 = vector.shape_cast %77 : vector<1x1x128xf32> to vector<1x128xf32>
    %79 = vector.shape_cast %76 : vector<1x128xf32> to vector<1x1x128xf32>
    tpu.vector_store %arg4[%c0_81, %c0_82, %c0_83], %79 {strides = array<i32>} : memref<1x2x128xf32, #tpu.memory_space<vmem>>, vector<1x1x128xf32>,
    %80 = arith.mulf %70, %70 : vector<64x128xf32>
    %cst_84 = arith.constant dense<0.000000e+00> : vector<128xf32>
    %81 = vector.multi_reduction <add>, %80, %cst_84 [0] : vector<64x128xf32> to vector<128xf32>
    %82 = vector.shape_cast %81 : vector<128xf32> to vector<1x128xf32>
    %c0_85 = arith.constant 0 : index
    %c1_86 = arith.constant 1 : index
    %c0_87 = arith.constant 0 : index
    %83 = vector.load %arg4[%c0_85, %c1_86, %c0_87] : memref<1x2x128xf32, #tpu.memory_space<vmem>>, vector<1x1x128xf32>
    %84 = vector.shape_cast %83 : vector<1x1x128xf32> to vector<1x128xf32>
    %85 = vector.shape_cast %82 : vector<1x128xf32> to vector<1x1x128xf32>
    tpu.vector_store %arg4[%c0_85, %c1_86, %c0_87], %85 {strides = array<i32>} : memref<1x2x128xf32, #tpu.memory_space<vmem>>, vector<1x1x128xf32>,
    return
  }
  func.func @transform_0(%arg0: i32) -> (i32, i32, i32, i32) {
    %c0_i32 = arith.constant 0 : i32
    %c0_i32_0 = arith.constant 0 : i32
    %c0_i32_1 = arith.constant 0 : i32
    %c0_i32_2 = arith.constant 0 : i32
    return %arg0, %c0_i32, %c0_i32_0, %c0_i32_1 : i32, i32, i32, i32
  }
  func.func @transform_1(%arg0: i32) -> (i32, i32, i32, i32) {
    %c0_i32 = arith.constant 0 : i32
    %c0_i32_0 = arith.constant 0 : i32
    %c0_i32_1 = arith.constant 0 : i32
    %c0_i32_2 = arith.constant 0 : i32
    %c0_i32_3 = arith.constant 0 : i32
    return %c0_i32, %c0_i32_0, %c0_i32_1, %c0_i32_2 : i32, i32, i32, i32
  }
  func.func @transform_2(%arg0: i32) -> (i32, i32, i32) {
    %c0_i32 = arith.constant 0 : i32
    %c0_i32_0 = arith.constant 0 : i32
    %c0_i32_1 = arith.constant 0 : i32
    return %arg0, %c0_i32, %c0_i32_0 : i32, i32, i32
  }
  func.func @transform_3(%arg0: i32) -> (i32, i32, i32) {
    %c0_i32 = arith.constant 0 : i32
    %c0_i32_0 = arith.constant 0 : i32
    %c0_i32_1 = arith.constant 0 : i32
    return %arg0, %c0_i32, %c0_i32_0 : i32, i32, i32
  }
}

module attributes {stable_mosaic.version = 11 : i64} {
  func.func @_conv_stats_kernel(%arg0: i32, %arg1: memref<1x10x10x128xf32, #tpu.memory_space<vmem>>, %arg2: memref<3x3x128x128xbf16, #tpu.memory_space<vmem>>, %arg3: memref<1x64x128xbf16, #tpu.memory_space<vmem>>, %arg4: memref<1x2x128xf32, #tpu.memory_space<vmem>>) attributes {dimension_semantics = [#tpu.dimension_semantics<parallel>], iteration_bounds = array<i64: 2>, scalar_prefetch = 0 : i64, scratch_operands = 0 : i64, tpu.core_type = #tpu.core_type<tc>, window_params = [{transform_indices = @transform_0, window_bounds = array<i64: 1, 10, 10, 128>}, {pipeline_mode = #tpu.pipeline_mode<synchronous>, transform_indices = @transform_1, window_bounds = array<i64: 3, 3, 128, 128>}, {transform_indices = @transform_2, window_bounds = array<i64: 1, 64, 128>}, {transform_indices = @transform_3, window_bounds = array<i64: 1, 2, 128>}]} {
    %c0 = arith.constant 0 : index
    %c0_0 = arith.constant 0 : index
    %c0_1 = arith.constant 0 : index
    %c0_2 = arith.constant 0 : index
    %0 = vector.load %arg1[%c0, %c0_0, %c0_1, %c0_2] : memref<1x10x10x128xf32, #tpu.memory_space<vmem>>, vector<1x8x8x128xf32>
    %1 = vector.shape_cast %0 : vector<1x8x8x128xf32> to vector<8x8x128xf32>
    %2 = vector.shape_cast %1 : vector<8x8x128xf32> to vector<64x128xf32>
    %3 = arith.truncf %2 : vector<64x128xf32> to vector<64x128xbf16>
    %c0_3 = arith.constant 0 : index
    %c0_4 = arith.constant 0 : index
    %c0_5 = arith.constant 0 : index
    %c0_6 = arith.constant 0 : index
    %4 = vector.load %arg2[%c0_3, %c0_4, %c0_5, %c0_6] : memref<3x3x128x128xbf16, #tpu.memory_space<vmem>>, vector<1x1x128x128xbf16>
    %5 = vector.shape_cast %4 : vector<1x1x128x128xbf16> to vector<128x128xbf16>
    %cst = arith.constant dense<0.000000e+00> : vector<64x128xf32>
    %6 = tpu.matmul %3, %5, %cst {dimension_numbers = #tpu.dot_dimension_numbers<[1], [0], [0], [1], [0, 0, 1, 1], [], []>} : vector<64x128xbf16>, vector<128x128xbf16>, vector<64x128xf32> -> vector<64x128xf32>
    %c0_7 = arith.constant 0 : index
    %c0_8 = arith.constant 0 : index
    %c1 = arith.constant 1 : index
    %c0_9 = arith.constant 0 : index
    %7 = vector.load %arg1[%c0_7, %c0_8, %c1, %c0_9] : memref<1x10x10x128xf32, #tpu.memory_space<vmem>>, vector<1x8x8x128xf32>
    %8 = vector.shape_cast %7 : vector<1x8x8x128xf32> to vector<8x8x128xf32>
    %9 = vector.shape_cast %8 : vector<8x8x128xf32> to vector<64x128xf32>
    %10 = arith.truncf %9 : vector<64x128xf32> to vector<64x128xbf16>
    %c0_10 = arith.constant 0 : index
    %c1_11 = arith.constant 1 : index
    %c0_12 = arith.constant 0 : index
    %c0_13 = arith.constant 0 : index
    %11 = vector.load %arg2[%c0_10, %c1_11, %c0_12, %c0_13] : memref<3x3x128x128xbf16, #tpu.memory_space<vmem>>, vector<1x1x128x128xbf16>
    %12 = vector.shape_cast %11 : vector<1x1x128x128xbf16> to vector<128x128xbf16>
    %cst_14 = arith.constant dense<0.000000e+00> : vector<64x128xf32>
    %13 = tpu.matmul %10, %12, %cst_14 {dimension_numbers = #tpu.dot_dimension_numbers<[1], [0], [0], [1], [0, 0, 1, 1], [], []>} : vector<64x128xbf16>, vector<128x128xbf16>, vector<64x128xf32> -> vector<64x128xf32>
    %14 = arith.addf %6, %13 : vector<64x128xf32>
    %c0_15 = arith.constant 0 : index
    %c0_16 = arith.constant 0 : index
    %c2 = arith.constant 2 : index
    %c0_17 = arith.constant 0 : index
    %15 = vector.load %arg1[%c0_15, %c0_16, %c2, %c0_17] : memref<1x10x10x128xf32, #tpu.memory_space<vmem>>, vector<1x8x8x128xf32>
    %16 = vector.shape_cast %15 : vector<1x8x8x128xf32> to vector<8x8x128xf32>
    %17 = vector.shape_cast %16 : vector<8x8x128xf32> to vector<64x128xf32>
    %18 = arith.truncf %17 : vector<64x128xf32> to vector<64x128xbf16>
    %c0_18 = arith.constant 0 : index
    %c2_19 = arith.constant 2 : index
    %c0_20 = arith.constant 0 : index
    %c0_21 = arith.constant 0 : index
    %19 = vector.load %arg2[%c0_18, %c2_19, %c0_20, %c0_21] : memref<3x3x128x128xbf16, #tpu.memory_space<vmem>>, vector<1x1x128x128xbf16>
    %20 = vector.shape_cast %19 : vector<1x1x128x128xbf16> to vector<128x128xbf16>
    %cst_22 = arith.constant dense<0.000000e+00> : vector<64x128xf32>
    %21 = tpu.matmul %18, %20, %cst_22 {dimension_numbers = #tpu.dot_dimension_numbers<[1], [0], [0], [1], [0, 0, 1, 1], [], []>} : vector<64x128xbf16>, vector<128x128xbf16>, vector<64x128xf32> -> vector<64x128xf32>
    %22 = arith.addf %14, %21 : vector<64x128xf32>
    %c0_23 = arith.constant 0 : index
    %c1_24 = arith.constant 1 : index
    %c0_25 = arith.constant 0 : index
    %c0_26 = arith.constant 0 : index
    %23 = vector.load %arg1[%c0_23, %c1_24, %c0_25, %c0_26] : memref<1x10x10x128xf32, #tpu.memory_space<vmem>>, vector<1x8x8x128xf32>
    %24 = vector.shape_cast %23 : vector<1x8x8x128xf32> to vector<8x8x128xf32>
    %25 = vector.shape_cast %24 : vector<8x8x128xf32> to vector<64x128xf32>
    %26 = arith.truncf %25 : vector<64x128xf32> to vector<64x128xbf16>
    %c1_27 = arith.constant 1 : index
    %c0_28 = arith.constant 0 : index
    %c0_29 = arith.constant 0 : index
    %c0_30 = arith.constant 0 : index
    %27 = vector.load %arg2[%c1_27, %c0_28, %c0_29, %c0_30] : memref<3x3x128x128xbf16, #tpu.memory_space<vmem>>, vector<1x1x128x128xbf16>
    %28 = vector.shape_cast %27 : vector<1x1x128x128xbf16> to vector<128x128xbf16>
    %cst_31 = arith.constant dense<0.000000e+00> : vector<64x128xf32>
    %29 = tpu.matmul %26, %28, %cst_31 {dimension_numbers = #tpu.dot_dimension_numbers<[1], [0], [0], [1], [0, 0, 1, 1], [], []>} : vector<64x128xbf16>, vector<128x128xbf16>, vector<64x128xf32> -> vector<64x128xf32>
    %30 = arith.addf %22, %29 : vector<64x128xf32>
    %c0_32 = arith.constant 0 : index
    %c1_33 = arith.constant 1 : index
    %c1_34 = arith.constant 1 : index
    %c0_35 = arith.constant 0 : index
    %31 = vector.load %arg1[%c0_32, %c1_33, %c1_34, %c0_35] : memref<1x10x10x128xf32, #tpu.memory_space<vmem>>, vector<1x8x8x128xf32>
    %32 = vector.shape_cast %31 : vector<1x8x8x128xf32> to vector<8x8x128xf32>
    %33 = vector.shape_cast %32 : vector<8x8x128xf32> to vector<64x128xf32>
    %34 = arith.truncf %33 : vector<64x128xf32> to vector<64x128xbf16>
    %c1_36 = arith.constant 1 : index
    %c1_37 = arith.constant 1 : index
    %c0_38 = arith.constant 0 : index
    %c0_39 = arith.constant 0 : index
    %35 = vector.load %arg2[%c1_36, %c1_37, %c0_38, %c0_39] : memref<3x3x128x128xbf16, #tpu.memory_space<vmem>>, vector<1x1x128x128xbf16>
    %36 = vector.shape_cast %35 : vector<1x1x128x128xbf16> to vector<128x128xbf16>
    %cst_40 = arith.constant dense<0.000000e+00> : vector<64x128xf32>
    %37 = tpu.matmul %34, %36, %cst_40 {dimension_numbers = #tpu.dot_dimension_numbers<[1], [0], [0], [1], [0, 0, 1, 1], [], []>} : vector<64x128xbf16>, vector<128x128xbf16>, vector<64x128xf32> -> vector<64x128xf32>
    %38 = arith.addf %30, %37 : vector<64x128xf32>
    %c0_41 = arith.constant 0 : index
    %c1_42 = arith.constant 1 : index
    %c2_43 = arith.constant 2 : index
    %c0_44 = arith.constant 0 : index
    %39 = vector.load %arg1[%c0_41, %c1_42, %c2_43, %c0_44] : memref<1x10x10x128xf32, #tpu.memory_space<vmem>>, vector<1x8x8x128xf32>
    %40 = vector.shape_cast %39 : vector<1x8x8x128xf32> to vector<8x8x128xf32>
    %41 = vector.shape_cast %40 : vector<8x8x128xf32> to vector<64x128xf32>
    %42 = arith.truncf %41 : vector<64x128xf32> to vector<64x128xbf16>
    %c1_45 = arith.constant 1 : index
    %c2_46 = arith.constant 2 : index
    %c0_47 = arith.constant 0 : index
    %c0_48 = arith.constant 0 : index
    %43 = vector.load %arg2[%c1_45, %c2_46, %c0_47, %c0_48] : memref<3x3x128x128xbf16, #tpu.memory_space<vmem>>, vector<1x1x128x128xbf16>
    %44 = vector.shape_cast %43 : vector<1x1x128x128xbf16> to vector<128x128xbf16>
    %cst_49 = arith.constant dense<0.000000e+00> : vector<64x128xf32>
    %45 = tpu.matmul %42, %44, %cst_49 {dimension_numbers = #tpu.dot_dimension_numbers<[1], [0], [0], [1], [0, 0, 1, 1], [], []>} : vector<64x128xbf16>, vector<128x128xbf16>, vector<64x128xf32> -> vector<64x128xf32>
    %46 = arith.addf %38, %45 : vector<64x128xf32>
    %c0_50 = arith.constant 0 : index
    %c2_51 = arith.constant 2 : index
    %c0_52 = arith.constant 0 : index
    %c0_53 = arith.constant 0 : index
    %47 = vector.load %arg1[%c0_50, %c2_51, %c0_52, %c0_53] : memref<1x10x10x128xf32, #tpu.memory_space<vmem>>, vector<1x8x8x128xf32>
    %48 = vector.shape_cast %47 : vector<1x8x8x128xf32> to vector<8x8x128xf32>
    %49 = vector.shape_cast %48 : vector<8x8x128xf32> to vector<64x128xf32>
    %50 = arith.truncf %49 : vector<64x128xf32> to vector<64x128xbf16>
    %c2_54 = arith.constant 2 : index
    %c0_55 = arith.constant 0 : index
    %c0_56 = arith.constant 0 : index
    %c0_57 = arith.constant 0 : index
    %51 = vector.load %arg2[%c2_54, %c0_55, %c0_56, %c0_57] : memref<3x3x128x128xbf16, #tpu.memory_space<vmem>>, vector<1x1x128x128xbf16>
    %52 = vector.shape_cast %51 : vector<1x1x128x128xbf16> to vector<128x128xbf16>
    %cst_58 = arith.constant dense<0.000000e+00> : vector<64x128xf32>
    %53 = tpu.matmul %50, %52, %cst_58 {dimension_numbers = #tpu.dot_dimension_numbers<[1], [0], [0], [1], [0, 0, 1, 1], [], []>} : vector<64x128xbf16>, vector<128x128xbf16>, vector<64x128xf32> -> vector<64x128xf32>
    %54 = arith.addf %46, %53 : vector<64x128xf32>
    %c0_59 = arith.constant 0 : index
    %c2_60 = arith.constant 2 : index
    %c1_61 = arith.constant 1 : index
    %c0_62 = arith.constant 0 : index
    %55 = vector.load %arg1[%c0_59, %c2_60, %c1_61, %c0_62] : memref<1x10x10x128xf32, #tpu.memory_space<vmem>>, vector<1x8x8x128xf32>
    %56 = vector.shape_cast %55 : vector<1x8x8x128xf32> to vector<8x8x128xf32>
    %57 = vector.shape_cast %56 : vector<8x8x128xf32> to vector<64x128xf32>
    %58 = arith.truncf %57 : vector<64x128xf32> to vector<64x128xbf16>
    %c2_63 = arith.constant 2 : index
    %c1_64 = arith.constant 1 : index
    %c0_65 = arith.constant 0 : index
    %c0_66 = arith.constant 0 : index
    %59 = vector.load %arg2[%c2_63, %c1_64, %c0_65, %c0_66] : memref<3x3x128x128xbf16, #tpu.memory_space<vmem>>, vector<1x1x128x128xbf16>
    %60 = vector.shape_cast %59 : vector<1x1x128x128xbf16> to vector<128x128xbf16>
    %cst_67 = arith.constant dense<0.000000e+00> : vector<64x128xf32>
    %61 = tpu.matmul %58, %60, %cst_67 {dimension_numbers = #tpu.dot_dimension_numbers<[1], [0], [0], [1], [0, 0, 1, 1], [], []>} : vector<64x128xbf16>, vector<128x128xbf16>, vector<64x128xf32> -> vector<64x128xf32>
    %62 = arith.addf %54, %61 : vector<64x128xf32>
    %c0_68 = arith.constant 0 : index
    %c2_69 = arith.constant 2 : index
    %c2_70 = arith.constant 2 : index
    %c0_71 = arith.constant 0 : index
    %63 = vector.load %arg1[%c0_68, %c2_69, %c2_70, %c0_71] : memref<1x10x10x128xf32, #tpu.memory_space<vmem>>, vector<1x8x8x128xf32>
    %64 = vector.shape_cast %63 : vector<1x8x8x128xf32> to vector<8x8x128xf32>
    %65 = vector.shape_cast %64 : vector<8x8x128xf32> to vector<64x128xf32>
    %66 = arith.truncf %65 : vector<64x128xf32> to vector<64x128xbf16>
    %c2_72 = arith.constant 2 : index
    %c2_73 = arith.constant 2 : index
    %c0_74 = arith.constant 0 : index
    %c0_75 = arith.constant 0 : index
    %67 = vector.load %arg2[%c2_72, %c2_73, %c0_74, %c0_75] : memref<3x3x128x128xbf16, #tpu.memory_space<vmem>>, vector<1x1x128x128xbf16>
    %68 = vector.shape_cast %67 : vector<1x1x128x128xbf16> to vector<128x128xbf16>
    %cst_76 = arith.constant dense<0.000000e+00> : vector<64x128xf32>
    %69 = tpu.matmul %66, %68, %cst_76 {dimension_numbers = #tpu.dot_dimension_numbers<[1], [0], [0], [1], [0, 0, 1, 1], [], []>} : vector<64x128xbf16>, vector<128x128xbf16>, vector<64x128xf32> -> vector<64x128xf32>
    %70 = arith.addf %62, %69 : vector<64x128xf32>
    %71 = arith.truncf %70 : vector<64x128xf32> to vector<64x128xbf16>
    %c0_77 = arith.constant 0 : index
    %c0_78 = arith.constant 0 : index
    %c0_79 = arith.constant 0 : index
    %72 = vector.load %arg3[%c0_77, %c0_78, %c0_79] : memref<1x64x128xbf16, #tpu.memory_space<vmem>>, vector<1x64x128xbf16>
    %73 = vector.shape_cast %72 : vector<1x64x128xbf16> to vector<64x128xbf16>
    %74 = vector.shape_cast %71 : vector<64x128xbf16> to vector<1x64x128xbf16>
    tpu.vector_store %arg3[%c0_77, %c0_78, %c0_79], %74 {strides = array<i32>} : memref<1x64x128xbf16, #tpu.memory_space<vmem>>, vector<1x64x128xbf16>,
    %cst_80 = arith.constant dense<0.000000e+00> : vector<128xf32>
    %75 = vector.multi_reduction <add>, %70, %cst_80 [0] : vector<64x128xf32> to vector<128xf32>
    %76 = vector.shape_cast %75 : vector<128xf32> to vector<1x128xf32>
    %c0_81 = arith.constant 0 : index
    %c0_82 = arith.constant 0 : index
    %c0_83 = arith.constant 0 : index
    %77 = vector.load %arg4[%c0_81, %c0_82, %c0_83] : memref<1x2x128xf32, #tpu.memory_space<vmem>>, vector<1x1x128xf32>
    %78 = vector.shape_cast %77 : vector<1x1x128xf32> to vector<1x128xf32>
    %79 = vector.shape_cast %76 : vector<1x128xf32> to vector<1x1x128xf32>
    tpu.vector_store %arg4[%c0_81, %c0_82, %c0_83], %79 {strides = array<i32>} : memref<1x2x128xf32, #tpu.memory_space<vmem>>, vector<1x1x128xf32>,
    %80 = arith.mulf %70, %70 : vector<64x128xf32>
    %cst_84 = arith.constant dense<0.000000e+00> : vector<128xf32>
    %81 = vector.multi_reduction <add>, %80, %cst_84 [0] : vector<64x128xf32> to vector<128xf32>
    %82 = vector.shape_cast %81 : vector<128xf32> to vector<1x128xf32>
    %c0_85 = arith.constant 0 : index
    %c1_86 = arith.constant 1 : index
    %c0_87 = arith.constant 0 : index
    %83 = vector.load %arg4[%c0_85, %c1_86, %c0_87] : memref<1x2x128xf32, #tpu.memory_space<vmem>>, vector<1x1x128xf32>
    %84 = vector.shape_cast %83 : vector<1x1x128xf32> to vector<1x128xf32>
    %85 = vector.shape_cast %82 : vector<1x128xf32> to vector<1x1x128xf32>
    tpu.vector_store %arg4[%c0_85, %c1_86, %c0_87], %85 {strides = array<i32>} : memref<1x2x128xf32, #tpu.memory_space<vmem>>, vector<1x1x128xf32>,
    return
  }
  func.func @transform_0(%arg0: i32) -> (i32, i32, i32, i32) {
    %c0_i32 = arith.constant 0 : i32
    %c0_i32_0 = arith.constant 0 : i32
    %c0_i32_1 = arith.constant 0 : i32
    %c0_i32_2 = arith.constant 0 : i32
    return %arg0, %c0_i32, %c0_i32_0, %c0_i32_1 : i32, i32, i32, i32
  }
  func.func @transform_1(%arg0: i32) -> (i32, i32, i32, i32) {
    %c0_i32 = arith.constant 0 : i32
    %c0_i32_0 = arith.constant 0 : i32
    %c0_i32_1 = arith.constant 0 : i32
    %c0_i32_2 = arith.constant 0 : i32
    %c0_i32_3 = arith.constant 0 : i32
    return %c0_i32, %c0_i32_0, %c0_i32_1, %c0_i32_2 : i32, i32, i32, i32
  }
  func.func @transform_2(%arg0: i32) -> (i32, i32, i32) {
    %c0_i32 = arith.constant 0 : i32
    %c0_i32_0 = arith.constant 0 : i32
    %c0_i32_1 = arith.constant 0 : i32
    return %arg0, %c0_i32, %c0_i32_0 : i32, i32, i32
  }
  func.func @transform_3(%arg0: i32) -> (i32, i32, i32) {
    %c0_i32 = arith.constant 0 : i32
    %c0_i32_0 = arith.constant 0 : i32
    %c0_i32_1 = arith.constant 0 : i32
    return %arg0, %c0_i32, %c0_i32_0 : i32, i32, i32
  }
}

module attributes {stable_mosaic.version = 11 : i64} {
  func.func @_conv_stats_kernel(%arg0: i32, %arg1: memref<1x8x8x128xf32, #tpu.memory_space<vmem>>, %arg2: memref<1x1x128x128xbf16, #tpu.memory_space<vmem>>, %arg3: memref<1x64x128xbf16, #tpu.memory_space<vmem>>, %arg4: memref<1x2x128xf32, #tpu.memory_space<vmem>>) attributes {dimension_semantics = [#tpu.dimension_semantics<parallel>], iteration_bounds = array<i64: 2>, scalar_prefetch = 0 : i64, scratch_operands = 0 : i64, tpu.core_type = #tpu.core_type<tc>, window_params = [{transform_indices = @transform_0, window_bounds = array<i64: 1, 8, 8, 128>}, {pipeline_mode = #tpu.pipeline_mode<synchronous>, transform_indices = @transform_1, window_bounds = array<i64: 1, 1, 128, 128>}, {transform_indices = @transform_2, window_bounds = array<i64: 1, 64, 128>}, {transform_indices = @transform_3, window_bounds = array<i64: 1, 2, 128>}]} {
    %c0 = arith.constant 0 : index
    %c0_0 = arith.constant 0 : index
    %c0_1 = arith.constant 0 : index
    %c0_2 = arith.constant 0 : index
    %0 = vector.load %arg1[%c0, %c0_0, %c0_1, %c0_2] : memref<1x8x8x128xf32, #tpu.memory_space<vmem>>, vector<1x8x8x128xf32>
    %1 = vector.shape_cast %0 : vector<1x8x8x128xf32> to vector<8x8x128xf32>
    %2 = vector.shape_cast %1 : vector<8x8x128xf32> to vector<64x128xf32>
    %3 = arith.truncf %2 : vector<64x128xf32> to vector<64x128xbf16>
    %c0_3 = arith.constant 0 : index
    %c0_4 = arith.constant 0 : index
    %c0_5 = arith.constant 0 : index
    %c0_6 = arith.constant 0 : index
    %4 = vector.load %arg2[%c0_3, %c0_4, %c0_5, %c0_6] : memref<1x1x128x128xbf16, #tpu.memory_space<vmem>>, vector<1x1x128x128xbf16>
    %5 = vector.shape_cast %4 : vector<1x1x128x128xbf16> to vector<128x128xbf16>
    %cst = arith.constant dense<0.000000e+00> : vector<64x128xf32>
    %6 = tpu.matmul %3, %5, %cst {dimension_numbers = #tpu.dot_dimension_numbers<[1], [0], [0], [1], [0, 0, 1, 1], [], []>} : vector<64x128xbf16>, vector<128x128xbf16>, vector<64x128xf32> -> vector<64x128xf32>
    %7 = arith.truncf %6 : vector<64x128xf32> to vector<64x128xbf16>
    %c0_7 = arith.constant 0 : index
    %c0_8 = arith.constant 0 : index
    %c0_9 = arith.constant 0 : index
    %8 = vector.load %arg3[%c0_7, %c0_8, %c0_9] : memref<1x64x128xbf16, #tpu.memory_space<vmem>>, vector<1x64x128xbf16>
    %9 = vector.shape_cast %8 : vector<1x64x128xbf16> to vector<64x128xbf16>
    %10 = vector.shape_cast %7 : vector<64x128xbf16> to vector<1x64x128xbf16>
    tpu.vector_store %arg3[%c0_7, %c0_8, %c0_9], %10 {strides = array<i32>} : memref<1x64x128xbf16, #tpu.memory_space<vmem>>, vector<1x64x128xbf16>,
    %cst_10 = arith.constant dense<0.000000e+00> : vector<128xf32>
    %11 = vector.multi_reduction <add>, %6, %cst_10 [0] : vector<64x128xf32> to vector<128xf32>
    %12 = vector.shape_cast %11 : vector<128xf32> to vector<1x128xf32>
    %c0_11 = arith.constant 0 : index
    %c0_12 = arith.constant 0 : index
    %c0_13 = arith.constant 0 : index
    %13 = vector.load %arg4[%c0_11, %c0_12, %c0_13] : memref<1x2x128xf32, #tpu.memory_space<vmem>>, vector<1x1x128xf32>
    %14 = vector.shape_cast %13 : vector<1x1x128xf32> to vector<1x128xf32>
    %15 = vector.shape_cast %12 : vector<1x128xf32> to vector<1x1x128xf32>
    tpu.vector_store %arg4[%c0_11, %c0_12, %c0_13], %15 {strides = array<i32>} : memref<1x2x128xf32, #tpu.memory_space<vmem>>, vector<1x1x128xf32>,
    %16 = arith.mulf %6, %6 : vector<64x128xf32>
    %cst_14 = arith.constant dense<0.000000e+00> : vector<128xf32>
    %17 = vector.multi_reduction <add>, %16, %cst_14 [0] : vector<64x128xf32> to vector<128xf32>
    %18 = vector.shape_cast %17 : vector<128xf32> to vector<1x128xf32>
    %c0_15 = arith.constant 0 : index
    %c1 = arith.constant 1 : index
    %c0_16 = arith.constant 0 : index
    %19 = vector.load %arg4[%c0_15, %c1, %c0_16] : memref<1x2x128xf32, #tpu.memory_space<vmem>>, vector<1x1x128xf32>
    %20 = vector.shape_cast %19 : vector<1x1x128xf32> to vector<1x128xf32>
    %21 = vector.shape_cast %18 : vector<1x128xf32> to vector<1x1x128xf32>
    tpu.vector_store %arg4[%c0_15, %c1, %c0_16], %21 {strides = array<i32>} : memref<1x2x128xf32, #tpu.memory_space<vmem>>, vector<1x1x128xf32>,
    return
  }
  func.func @transform_0(%arg0: i32) -> (i32, i32, i32, i32) {
    %c0_i32 = arith.constant 0 : i32
    %c0_i32_0 = arith.constant 0 : i32
    %c0_i32_1 = arith.constant 0 : i32
    %c0_i32_2 = arith.constant 0 : i32
    return %arg0, %c0_i32, %c0_i32_0, %c0_i32_1 : i32, i32, i32, i32
  }
  func.func @transform_1(%arg0: i32) -> (i32, i32, i32, i32) {
    %c0_i32 = arith.constant 0 : i32
    %c0_i32_0 = arith.constant 0 : i32
    %c0_i32_1 = arith.constant 0 : i32
    %c0_i32_2 = arith.constant 0 : i32
    %c0_i32_3 = arith.constant 0 : i32
    return %c0_i32, %c0_i32_0, %c0_i32_1, %c0_i32_2 : i32, i32, i32, i32
  }
  func.func @transform_2(%arg0: i32) -> (i32, i32, i32) {
    %c0_i32 = arith.constant 0 : i32
    %c0_i32_0 = arith.constant 0 : i32
    %c0_i32_1 = arith.constant 0 : i32
    return %arg0, %c0_i32, %c0_i32_0 : i32, i32, i32
  }
  func.func @transform_3(%arg0: i32) -> (i32, i32, i32) {
    %c0_i32 = arith.constant 0 : i32
    %c0_i32_0 = arith.constant 0 : i32
    %c0_i32_1 = arith.constant 0 : i32
    return %arg0, %c0_i32, %c0_i32_0 : i32, i32, i32
  }
}

module attributes {stable_mosaic.version = 11 : i64} {
  func.func @_bn_se_add_relu_kernel(%arg0: i32, %arg1: i32, %arg2: memref<1x64x128xbf16, #tpu.memory_space<vmem>>, %arg3: memref<1x64x128xbf16, #tpu.memory_space<vmem>>, %arg4: memref<1x1x128xf32, #tpu.memory_space<vmem>>, %arg5: memref<1x1x128xf32, #tpu.memory_space<vmem>>, %arg6: memref<1x1x128xf32, #tpu.memory_space<vmem>>, %arg7: memref<1x1x128xf32, #tpu.memory_space<vmem>>, %arg8: memref<1x64x128xf32, #tpu.memory_space<vmem>>) attributes {dimension_semantics = [#tpu.dimension_semantics<parallel>, #tpu.dimension_semantics<parallel>], iteration_bounds = array<i64: 2, 1>, scalar_prefetch = 0 : i64, scratch_operands = 0 : i64, tpu.core_type = #tpu.core_type<tc>, window_params = [{transform_indices = @transform_0, window_bounds = array<i64: 1, 64, 128>}, {transform_indices = @transform_1, window_bounds = array<i64: 1, 64, 128>}, {transform_indices = @transform_2, window_bounds = array<i64: 1, 1, 128>}, {transform_indices = @transform_3, window_bounds = array<i64: 1, 1, 128>}, {pipeline_mode = #tpu.pipeline_mode<synchronous>, transform_indices = @transform_4, window_bounds = array<i64: 1, 1, 128>}, {pipeline_mode = #tpu.pipeline_mode<synchronous>, transform_indices = @transform_5, window_bounds = array<i64: 1, 1, 128>}, {transform_indices = @transform_6, window_bounds = array<i64: 1, 64, 128>}]} {
    %c0 = arith.constant 0 : index
    %c0_0 = arith.constant 0 : index
    %c0_1 = arith.constant 0 : index
    %0 = vector.load %arg2[%c0, %c0_0, %c0_1] : memref<1x64x128xbf16, #tpu.memory_space<vmem>>, vector<1x64x128xbf16>
    %1 = arith.extf %0 : vector<1x64x128xbf16> to vector<1x64x128xf32>
    %c0_2 = arith.constant 0 : index
    %c0_3 = arith.constant 0 : index
    %c0_4 = arith.constant 0 : index
    %2 = vector.load %arg4[%c0_2, %c0_3, %c0_4] : memref<1x1x128xf32, #tpu.memory_space<vmem>>, vector<1x1x128xf32>
    %3 = vector.broadcast %2 : vector<1x1x128xf32> to vector<1x64x128xf32>
    %4 = arith.mulf %1, %3 : vector<1x64x128xf32>
    %c0_5 = arith.constant 0 : index
    %c0_6 = arith.constant 0 : index
    %c0_7 = arith.constant 0 : index
    %5 = vector.load %arg5[%c0_5, %c0_6, %c0_7] : memref<1x1x128xf32, #tpu.memory_space<vmem>>, vector<1x1x128xf32>
    %6 = vector.broadcast %5 : vector<1x1x128xf32> to vector<1x64x128xf32>
    %7 = arith.addf %4, %6 : vector<1x64x128xf32>
    %c0_8 = arith.constant 0 : index
    %c0_9 = arith.constant 0 : index
    %c0_10 = arith.constant 0 : index
    %8 = vector.load %arg3[%c0_8, %c0_9, %c0_10] : memref<1x64x128xbf16, #tpu.memory_space<vmem>>, vector<1x64x128xbf16>
    %9 = arith.extf %8 : vector<1x64x128xbf16> to vector<1x64x128xf32>
    %c0_11 = arith.constant 0 : index
    %c0_12 = arith.constant 0 : index
    %c0_13 = arith.constant 0 : index
    %10 = vector.load %arg6[%c0_11, %c0_12, %c0_13] : memref<1x1x128xf32, #tpu.memory_space<vmem>>, vector<1x1x128xf32>
    %11 = vector.broadcast %10 : vector<1x1x128xf32> to vector<1x64x128xf32>
    %12 = arith.mulf %9, %11 : vector<1x64x128xf32>
    %c0_14 = arith.constant 0 : index
    %c0_15 = arith.constant 0 : index
    %c0_16 = arith.constant 0 : index
    %13 = vector.load %arg7[%c0_14, %c0_15, %c0_16] : memref<1x1x128xf32, #tpu.memory_space<vmem>>, vector<1x1x128xf32>
    %14 = vector.broadcast %13 : vector<1x1x128xf32> to vector<1x64x128xf32>
    %15 = arith.addf %12, %14 : vector<1x64x128xf32>
    %16 = arith.addf %7, %15 : vector<1x64x128xf32>
    %cst = arith.constant 0.000000e+00 : f32
    %17 = vector.broadcast %cst : f32 to vector<1x64x128xf32>
    %18 = arith.maximumf %16, %17 : vector<1x64x128xf32>
    %c0_17 = arith.constant 0 : index
    %c0_18 = arith.constant 0 : index
    %c0_19 = arith.constant 0 : index
    %19 = vector.load %arg8[%c0_17, %c0_18, %c0_19] : memref<1x64x128xf32, #tpu.memory_space<vmem>>, vector<1x64x128xf32>
    tpu.vector_store %arg8[%c0_17, %c0_18, %c0_19], %18 {strides = array<i32>} : memref<1x64x128xf32, #tpu.memory_space<vmem>>, vector<1x64x128xf32>,
    return
  }
  func.func @transform_0(%arg0: i32, %arg1: i32) -> (i32, i32, i32) {
    %c0_i32 = arith.constant 0 : i32
    %c0_i32_0 = arith.constant 0 : i32
    return %arg0, %arg1, %c0_i32 : i32, i32, i32
  }
  func.func @transform_1(%arg0: i32, %arg1: i32) -> (i32, i32, i32) {
    %c0_i32 = arith.constant 0 : i32
    %c0_i32_0 = arith.constant 0 : i32
    return %arg0, %arg1, %c0_i32 : i32, i32, i32
  }
  func.func @transform_2(%arg0: i32, %arg1: i32) -> (i32, i32, i32) {
    %c0_i32 = arith.constant 0 : i32
    %c0_i32_0 = arith.constant 0 : i32
    %c0_i32_1 = arith.constant 0 : i32
    return %arg0, %c0_i32, %c0_i32_0 : i32, i32, i32
  }
  func.func @transform_3(%arg0: i32, %arg1: i32) -> (i32, i32, i32) {
    %c0_i32 = arith.constant 0 : i32
    %c0_i32_0 = arith.constant 0 : i32
    %c0_i32_1 = arith.constant 0 : i32
    return %arg0, %c0_i32, %c0_i32_0 : i32, i32, i32
  }
  func.func @transform_4(%arg0: i32, %arg1: i32) -> (i32, i32, i32) {
    %c0_i32 = arith.constant 0 : i32
    %c0_i32_0 = arith.constant 0 : i32
    %c0_i32_1 = arith.constant 0 : i32
    %c0_i32_2 = arith.constant 0 : i32
    return %c0_i32, %c0_i32_0, %c0_i32_1 : i32, i32, i32
  }
  func.func @transform_5(%arg0: i32, %arg1: i32) -> (i32, i32, i32) {
    %c0_i32 = arith.constant 0 : i32
    %c0_i32_0 = arith.constant 0 : i32
    %c0_i32_1 = arith.constant 0 : i32
    %c0_i32_2 = arith.constant 0 : i32
    return %c0_i32, %c0_i32_0, %c0_i32_1 : i32, i32, i32
  }
  func.func @transform_6(%arg0: i32, %arg1: i32) -> (i32, i32, i32) {
    %c0_i32 = arith.constant 0 : i32
    %c0_i32_0 = arith.constant 0 : i32
    return %arg0, %arg1, %c0_i32 : i32, i32, i32
  }
}

</mosaic_0001>

<bundles_post_ra>
// kernel: basic_block_forward.7
= control target key start
LH: loop header
LB: loop body
LE: loop exit
PB: predicated region body
PF: predicated region fallthrough
CT: control target
= control target key end

     0   :  { %s735_s21 = smov 0   ;;  %s737_s22 = smov 0   ;;  %s851_s0 = inlined_call_operand.vmem [shape: bf16[2,64,128], index: 0, kind: input, shape index: {}]   ;;  %s852_s1 = inlined_call_operand.vmem [shape: bf16[2,64,128], index: 1, kind: input, shape index: {}]   ;;  %s853_s2 = inlined_call_operand.vmem [shape: f32[2,1,128], index: 2, kind: input, shape index: {}]   ;;  %s854_s3 = inlined_call_operand.vmem [shape: f32[2,1,128], index: 3, kind: input, shape index: {}]   ;;  %s855_s4 = inlined_call_operand.vmem [shape: f32[1,1,128], index: 4, kind: input, shape index: {}]   ;;  %s856_s5 = inlined_call_operand.vmem [shape: f32[1,1,128], index: 5, kind: input, shape index: {}]   ;;  %s857_s6 = inlined_call_operand.vmem [shape: f32[2,64,128], index: 6, kind: output, shape index: {}]  }
   0x1   :  { %s739_s23 = smov 0  }
   0x2 LB: > { %s28_s24 = sadd.s32 1, %s694_s22  ;;  %p598_p0 = scmp.ge.s32.totalorder %s698_s23, 1  ;;  %s698_s23 = sphi %s739_s23, %s16_s23   ;;  %s694_s22 = sphi %s737_s22, %s859_s22   ;;  %s690_s21 = sphi %s735_s21, %s858_s21  }
   0x3   : > { %p30_p1 = scmp.ge.s32.totalorder %s28_s24, 2  ;;  %p266_p2 = scmp.lt.s32.totalorder %s698_s23, 3 }
   0x5   : > { %s861_s24 = smov (%p30_p1, %s28_s24), 0  ;;  %p267_p3 = pnand %p598_p0, %p266_p2 }
   0x6   : > { %p320_p4 = scmp.lt.s32.totalorder (!%p267_p3), %s690_s21, 1 }
   0x7   : > { %270 = sbr.rel (%p267_p3) target bundleno = 38 (0x26), region = 44 }
   0xc   : > { %s863_s21 = smov (!%p320_p4, %s690_s21), 1  ;;  %v775_v1 = vld [vmem:[%s855_s4] ss:$0 sm:$0xff] }
   0xd   : > { %s611_s25 = sshll.u32 %s863_s21, 5  ;;  %s341_s28 = scalar_lea.vmem %s853_s2, %s863_s21  ;;  %v790_v11 = vld [vmem:[%s856_s5] ss:$0 sm:$0xff] }
   0xe   : > { %s763_s7 = scalar_lea.vmem %s851_s0, %s611_s25  ;;  %s768_s10 = scalar_lea.vmem %s852_s1, %s611_s25  ;;  %v770_v0 = vld [vmem:[%s341_s28] ss:$0 sm:$0xff] }
   0xf   : > { %s344_s15 = scalar_lea.vmem %s854_s3, %s863_s21  ;;  %v615_v2 = vld [vmem:[%s763_s7] sm:$0xff]   ;;  %v646_v4 = vld [vmem:[%s763_s7 + $0x8] sm:$0xff]   ;;  %v647_v24 = vld [vmem:[%s763_s7 + $0x10] sm:$0xff]   ;;  %s613_s18 = sshll.u32 %s863_s21, 6 }
  0x10   : > { %v631_v3 = vld [vmem:[%s768_s10] sm:$0xff]   ;;  %v616_v5 = vunpack.c.l.bf16 %v615_v2  ;;  %v617_v7 = vunpack.c.h.bf16 %v615_v2  ;;  %v649_v9 = vld [vmem:[%s768_s10 + $0x8] sm:$0xff]   ;;  %v620_v12 = vunpack.c.l.bf16 %v646_v4  ;;  %v621_v14 = vunpack.c.h.bf16 %v646_v4  ;;  %v650_v25 = vld [vmem:[%s768_s10 + $0x10] sm:$0xff]   ;;  %s814_s21 = scalar_lea.vmem %s857_s6, %s613_s18 }
  0x11   : > { %v632_v6 = vunpack.c.l.bf16 %v631_v3  ;;  %v633_v8 = vunpack.c.h.bf16 %v631_v3  ;;  %v785_v10 = vld [vmem:[%s344_s15] ss:$0 sm:$0xff]  ;;  %v636_v13 = vunpack.c.l.bf16 %v649_v9  ;;  %v637_v15 = vunpack.c.h.bf16 %v649_v9  ;;  %v648_v42 = vld [vmem:[%s763_s7 + $0x18] sm:$0xff]  }
  0x12   : > { %v378_v16 = vmul.f32 %v616_v5, %v770_v0  ;;  %v379_v18 = vmul.f32 %v617_v7, %v770_v0  ;;  %v380_v20 = vmul.f32 %v620_v12, %v770_v0  ;;  %v381_v22 = vmul.f32 %v621_v14, %v770_v0  ;;  %v651_v43 = vld [vmem:[%s768_s10 + $0x18] sm:$0xff]  }
  0x13   : > { %v424_v17 = vmul.f32 %v632_v6, %v775_v1  ;;  %v425_v19 = vmul.f32 %v633_v8, %v775_v1  ;;  %v426_v21 = vmul.f32 %v636_v13, %v775_v1  ;;  %v427_v23 = vmul.f32 %v637_v15, %v775_v1 }
  0x14   : > { %v393_v26 = vadd.f32 %v785_v10, %v378_v16  ;;  %v394_v28 = vadd.f32 %v785_v10, %v379_v18  ;;  %v395_v30 = vadd.f32 %v785_v10, %v380_v20  ;;  %v396_v32 = vadd.f32 %v785_v10, %v381_v22 }
  0x15   : > { %v439_v27 = vadd.f32 %v790_v11, %v424_v17  ;;  %v440_v29 = vadd.f32 %v790_v11, %v425_v19  ;;  %v441_v31 = vadd.f32 %v790_v11, %v426_v21  ;;  %v442_v33 = vadd.f32 %v790_v11, %v427_v23 }
  0x16   : > { %v624_v36 = vunpack.c.l.bf16 %v647_v24  ;;  %v640_v37 = vunpack.c.l.bf16 %v650_v25  ;;  %v625_v40 = vunpack.c.h.bf16 %v647_v24  ;;  %v641_v41 = vunpack.c.h.bf16 %v650_v25 }
  0x17   : > { %v447_v34 = vadd.f32 %v439_v27, %v393_v26  ;;  %v448_v35 = vadd.f32 %v440_v29, %v394_v28  ;;  %v449_v38 = vadd.f32 %v441_v31, %v395_v30  ;;  %v450_v39 = vadd.f32 %v442_v33, %v396_v32 }
  0x18   : > { %v382_v46 = vmul.f32 %v624_v36, %v770_v0  ;;  %v428_v47 = vmul.f32 %v640_v37, %v775_v1  ;;  %v383_v50 = vmul.f32 %v625_v40, %v770_v0  ;;  %v429_v51 = vmul.f32 %v641_v41, %v775_v1 }
  0x19   : > { %v455_v44 = vmax.f32 %v447_v34, 0.0  ;;  %v456_v45 = vmax.f32 %v448_v35, 0.0  ;;  %v457_v48 = vmax.f32 %v449_v38, 0.0  ;;  %v458_v49 = vmax.f32 %v450_v39, 0.0 }
  0x1a   : > { %v397_v52 = vadd.f32 %v785_v10, %v382_v46  ;;  %v443_v53 = vadd.f32 %v790_v11, %v428_v47  ;;  %v628_v54 = vunpack.c.l.bf16 %v648_v42  ;;  %v644_v55 = vunpack.c.l.bf16 %v651_v43 }
  0x1b   : > { %463 = vst [vmem:[%s814_s21] sm:$0xff] %v455_v44  ;;  %464 = vst [vmem:[%s814_s21 + $0x8] sm:$0xff] %v456_v45  ;;  %v398_v56 = vadd.f32 %v785_v10, %v383_v50  ;;  %v444_v57 = vadd.f32 %v790_v11, %v429_v51  ;;  %v629_v58 = vunpack.c.h.bf16 %v648_v42  ;;  %v645_v59 = vunpack.c.h.bf16 %v651_v43 }
  0x1c   : > { %465 = vst [vmem:[%s814_s21 + $0x10] sm:$0xff] %v457_v48  ;;  %466 = vst [vmem:[%s814_s21 + $0x18] sm:$0xff] %v458_v49  ;;  %v451_v60 = vadd.f32 %v443_v53, %v397_v52  ;;  %v384_v61 = vmul.f32 %v628_v54, %v770_v0  ;;  %v430_v62 = vmul.f32 %v644_v55, %v775_v1 }
  0x1d   : > { %v452_v63 = vadd.f32 %v444_v57, %v398_v56  ;;  %v385_v2 = vmul.f32 %v629_v58, %v770_v0  ;;  %v431_v3 = vmul.f32 %v645_v59, %v775_v1 }
  0x1e   : > { %v459_v4 = vmax.f32 %v451_v60, 0.0  ;;  %v399_v5 = vadd.f32 %v785_v10, %v384_v61  ;;  %v445_v6 = vadd.f32 %v790_v11, %v430_v62 }
  0x1f   : > { %v460_v7 = vmax.f32 %v452_v63, 0.0  ;;  %v400_v8 = vadd.f32 %v785_v10, %v385_v2  ;;  %v446_v9 = vadd.f32 %v790_v11, %v431_v3 }
  0x20   : > { %467 = vst [vmem:[%s814_s21 + $0x20] sm:$0xff] %v459_v4  ;;  %v453_v12 = vadd.f32 %v445_v6, %v399_v5 }
  0x21   : > { %468 = vst [vmem:[%s814_s21 + $0x28] sm:$0xff] %v460_v7  ;;  %v454_v13 = vadd.f32 %v446_v9, %v400_v8 }
  0x22   : > { %v461_v14 = vmax.f32 %v453_v12, 0.0 }
  0x23   : > { %v462_v15 = vmax.f32 %v454_v13, 0.0 }
  0x24   : > { %469 = vst [vmem:[%s814_s21 + $0x30] sm:$0xff] %v461_v14 }
  0x25   : > { %470 = vst [vmem:[%s814_s21 + $0x38] sm:$0xff] %v462_v15 }
  0x26 PF: > { %s16_s23 = sadd.s32 1, %s698_s23   ;;  %s858_s21 = smov %s694_s22 }
  0x27   : > { %p13_p5 = scmp.ge.s32.totalorder %s16_s23, 4   ;;  %s859_s22 = smov %s861_s24 }
  0x29   :  { %15 = sbr.rel (!%p13_p5) target bundleno = 2 (0x2), region = 83 }

// kernel: basic_block_forward.6
= control target key start
LH: loop header
LB: loop body
LE: loop exit
PB: predicated region body
PF: predicated region fallthrough
CT: control target
= control target key end

     0   :  { %s643_s12 = smov 0   ;;  %s702_s0 = inlined_call_operand.vmem [shape: f32[2,8,8,128], index: 0, kind: input, shape index: {}]   ;;  %s703_s1 = inlined_call_operand.vmem [shape: bf16[1,1,128,128], index: 1, kind: input, shape index: {}]   ;;  %s704_s2 = inlined_call_operand.vmem [shape: bf16[2,64,128], index: 2, kind: output, shape index: {0}]   ;;  %s705_s3 = inlined_call_operand.vmem [shape: f32[2,2,128], index: 3, kind: output, shape index: {1}]  }
   0x1 LB: > { %s486_s13 = sadd.s32 4294967295, %s621_s12   ;;  %p490_p0 = scmp.ge.s32.totalorder %s621_s12, 1  ;;  %s621_s12 = sphi %s643_s12, %s14_s12  }
   0x2   : > { %p140_p1 = scmp.lt.s32.totalorder %s621_s12, 3 }
   0x4   : > { %p141_p2 = pnand %p490_p0, %p140_p1 }
   0x5   : > { %p168_p3 = scmp.lt.s32.totalorder (!%p141_p2), %s486_s13, 1 }
   0x6   : > { %144 = sbr.rel (%p141_p2) target bundleno = 272 (0x110), region = 28 }
   0xb   : > { %v607_v0 = vld [vmem:[%s703_s1 + $0x38] sm:$0xff]   ;;  %v608_v1 = vld [vmem:[%s703_s1 + $0x30] sm:$0xff]   ;;  %s707_s13 = smov (!%p168_p3, %s486_s13), 1  ;;  %v609_v2 = vld [vmem:[%s703_s1 + $0x28] sm:$0xff]  }
   0xc   : > { %559 = vmatprep.subr.bf16.mxu0 %v607_v0  ;;  %583 = vmatprep.subr.bf16.mxu1 %v607_v0  ;;  %s514_s20 = sshll.u32 %s707_s13, 6  ;;  %v610_v3 = vld [vmem:[%s703_s1 + $0x20] sm:$0xff]   ;;  %v611_v10 = vld [vmem:[%s703_s1 + $0x18] sm:$0xff]   ;;  %v612_v11 = vld [vmem:[%s703_s1 + $0x10] sm:$0xff]   ;;  %s515_s7 = sshll.u32 %s707_s13, 5 }
   0xd   : > { %560 = vmatpush3.bf16.msra.mxu0 %v607_v0  ;;  %591 = vmatpush3.bf16.msra.mxu1 %v607_v0  ;;  %s666_s23 = scalar_lea.vmem %s702_s0, %s514_s20  ;;  %v613_v12 = vld [vmem:[%s703_s1 + $0x8] sm:$0xff]   ;;  %v614_v13 = vld [vmem:[%s703_s1] sm:$0xff]   ;;  %s177_s10 = scalar_lea.vmem %s704_s2, %s515_s7 }
   0xe   : > { %561 = vmatprep.subr.bf16.mxu0 %v608_v1  ;;  %584 = vmatprep.subr.bf16.mxu1 %v608_v1  ;;  %v183_v4 = vld [vmem:[%s666_s23] sm:$0xff]  ;;  %v184_v5 = vld [vmem:[%s666_s23 + $0x8] sm:$0xff]  ;;  %v185_v14 = vld [vmem:[%s666_s23 + $0x10] sm:$0xff]  ;;  %s495_s11 = sshll.u32 %s707_s13, 1 }
   0xf   : > { %v191_v6 = vpack.c.bf16 %v184_v5, %v183_v4  ;;  %v187_v7 = vld [vmem:[%s666_s23 + $0x20] sm:$0xff]  ;;  %v188_v8 = vld [vmem:[%s666_s23 + $0x28] sm:$0xff]  ;;  %v186_v15 = vld [vmem:[%s666_s23 + $0x18] sm:$0xff]  ;;  %s181_s16 = scalar_lea.vmem %s705_s3, %s495_s11 }
  0x10   : > { %v193_v9 = vpack.c.bf16 %v188_v8, %v187_v7  ;;  %v189_v16 = vld [vmem:[%s666_s23 + $0x30] sm:$0xff]  ;;  %v190_v17 = vld [vmem:[%s666_s23 + $0x38] sm:$0xff]  ;;  %v192_v18 = vpack.c.bf16 %v186_v15, %v185_v14 }
  0x11   : > { %562 = vmatpush3.bf16.msra.mxu0 %v608_v1  ;;  %592 = vmatpush3.bf16.msra.mxu1 %v608_v1  ;;  %v194_v19 = vpack.c.bf16 %v190_v17, %v189_v16 }
  0x12   : > { %563 = vmatprep.subr.bf16.mxu0 %v609_v2  ;;  %585 = vmatprep.subr.bf16.mxu1 %v609_v2 }
  0x13   : > { %575 = vmatprep.mubr.bf16.mxu0 %v191_v6  ;;  %579 = vmatprep.mubr.bf16.mxu1 %v193_v9 }
  0x15   : > { %564 = vmatpush3.bf16.msra.mxu0 %v609_v2  ;;  %593 = vmatpush3.bf16.msra.mxu1 %v609_v2 }
  0x16   : > { %565 = vmatprep.subr.bf16.mxu0 %v610_v3  ;;  %586 = vmatprep.subr.bf16.mxu1 %v610_v3 }
  0x19   : > { %566 = vmatpush3.bf16.msra.mxu0 %v610_v3  ;;  %594 = vmatpush3.bf16.msra.mxu1 %v610_v3 }
  0x1a   : > { %567 = vmatprep.subr.bf16.mxu0 %v611_v10  ;;  %587 = vmatprep.subr.bf16.mxu1 %v611_v10 }
  0x1d   : > { %568 = vmatpush3.bf16.msra.mxu0 %v611_v10  ;;  %595 = vmatpush3.bf16.msra.mxu1 %v611_v10 }
  0x1e   : > { %569 = vmatprep.subr.bf16.mxu0 %v612_v11  ;;  %588 = vmatprep.subr.bf16.mxu1 %v612_v11 }
  0x21   : > { %570 = vmatpush3.bf16.msra.mxu0 %v612_v11  ;;  %596 = vmatpush3.bf16.msra.mxu1 %v612_v11 }
  0x22   : > { %571 = vmatprep.subr.bf16.mxu0 %v613_v12  ;;  %589 = vmatprep.subr.bf16.mxu1 %v613_v12 }
  0x25   : > { %572 = vmatpush3.bf16.msra.mxu0 %v613_v12  ;;  %597 = vmatpush3.bf16.msra.mxu1 %v613_v12 }
  0x26   : > { %573 = vmatprep.subr.bf16.mxu0 %v614_v13  ;;  %590 = vmatprep.subr.bf16.mxu1 %v614_v13 }
  0x29   : > { %574 = vmatpush3.bf16.msra.mxu0 %v614_v13  ;;  %598 = vmatpush3.bf16.msra.mxu1 %v614_v13 }
  0x2c   : > { %576 = vmatmul.mubr.bf16.vlgmr.msra.gmra.mxu0 %v192_v18  ;;  %580 = vmatmul.mubr.bf16.vlgmr.msra.gmra.mxu1 %v194_v19 }
  0xec   : > { %v577_v20 = vpop.f32.mrf.mxu0  ;;  %v581_v21 = vpop.f32.mrf.mxu1 }
  0xed   : > { %v380_v35 = vmul.f32 %v577_v20, %v577_v20  ;;  %v384_v47 = vmul.f32 %v581_v21, %v581_v21 }
  0xee   : > { %v293_v22 = vpop.f32.mrf.mxu0  ;;  %v309_v23 = vpop.f32.mrf.mxu1 }
  0xef   : > { %v378_v28 = vmul.f32 %v293_v22, %v293_v22  ;;  %v382_v41 = vmul.f32 %v309_v23, %v309_v23 }
  0xf0   : > { %v578_v24 = vpop.f32.mrf.mxu0  ;;  %v582_v25 = vpop.f32.mrf.mxu1 }
  0xf1   : > { %v532_v26 = vpack.c.bf16 %v578_v24, %v577_v20  ;;  %v542_v27 = vpack.c.bf16 %v582_v25, %v581_v21  ;;  %v381_v38 = vmul.f32 %v578_v24, %v578_v24  ;;  %v385_v50 = vmul.f32 %v582_v25, %v582_v25 }
  0xf2   : > { %v296_v29 = vpop.f32.mrf.mxu0  ;;  %v312_v30 = vpop.f32.mrf.mxu1 }
  0xf3   : > { %544 = vst [vmem:[%s177_s10 + $0x8] sm:$0xff] %v532_v26   ;;  %v527_v31 = vpack.c.bf16 %v296_v29, %v293_v22  ;;  %v364_v32 = vadd.f32 %v296_v29, %v293_v22  ;;  %v379_v33 = vmul.f32 %v296_v29, %v296_v29  ;;  %546 = vst [vmem:[%s177_s10 + $0x18] sm:$0xff] %v542_v27  }
  0xf4   : > { %v537_v34 = vpack.c.bf16 %v312_v30, %v309_v23  ;;  %v383_v45 = vmul.f32 %v312_v30, %v312_v30 }
  0xf5   : > { %528 = vst [vmem:[%s177_s10] sm:$0xff] %v527_v31   ;;  %v365_v36 = vadd.f32 %v577_v20, %v364_v32  ;;  %v386_v37 = vadd.f32 %v379_v33, %v378_v28 }
  0xf6   : > { %545 = vst [vmem:[%s177_s10 + $0x10] sm:$0xff] %v537_v34  }
  0xf7   : > { %v387_v39 = vadd.f32 %v386_v37, %v380_v35  ;;  %v366_v40 = vadd.f32 %v578_v24, %v365_v36 }
  0xf9   : > { %v367_v42 = vadd.f32 %v366_v40, %v309_v23  ;;  %v388_v43 = vadd.f32 %v387_v39, %v381_v38 }
  0xfb   : > { %v368_v44 = vadd.f32 %v367_v42, %v312_v30  ;;  %v389_v46 = vadd.f32 %v388_v43, %v382_v41 }
  0xfd   : > { %v369_v48 = vadd.f32 %v581_v21, %v368_v44  ;;  %v390_v49 = vadd.f32 %v389_v46, %v383_v45 }
  0xff   : > { %v370_v51 = vadd.f32 %v582_v25, %v369_v48  ;;  %v391_v52 = vadd.f32 %v390_v49, %v384_v47 }
 0x101   : > { %v371_v53 = vrot.slane %v370_v51, 4  ;;  %v392_v54 = vadd.f32 %v391_v52, %v385_v50 }
 0x103   : > { %v372_v55 = vadd.f32 %v371_v53, %v370_v51  ;;  %v393_v56 = vrot.slane %v392_v54, 4 }
 0x105   : > { %v373_v57 = vrot.slane %v372_v55, 2  ;;  %v394_v58 = vadd.f32 %v393_v56, %v392_v54 }
 0x107   : > { %v374_v59 = vadd.f32 %v373_v57, %v372_v55  ;;  %v395_v60 = vrot.slane %v394_v58, 2 }
 0x109   : > { %v375_v61 = vrot.slane %v374_v59, 1  ;;  %v396_v62 = vadd.f32 %v395_v60, %v394_v58 }
 0x10b   : > { %v376_v63 = vadd.f32 %v375_v61, %v374_v59  ;;  %v397_v0 = vrot.slane %v396_v62, 1 }
 0x10d   : > { %377 = vst [vmem:[%s181_s16] sm:$0x1] %v376_v63  ;;  %v398_v1 = vadd.f32 %v397_v0, %v396_v62 }
 0x10f   : > { %399 = vst [vmem:[%s181_s16 + $0x1] sm:$0x1] %v398_v1 }
 0x110 PF: > { %s14_s12 = sadd.s32 1, %s621_s12  }
 0x111   : > { %p11_p4 = scmp.ge.s32.totalorder %s14_s12, 4  }
 0x113   :  { %13 = sbr.rel (!%p11_p4) target bundleno = 1 (0x1), region = 70 }

// kernel: basic_block_forward.5
= control target key start
LH: loop header
LB: loop body
LE: loop exit
PB: predicated region body
PF: predicated region fallthrough
CT: control target
= control target key end

     0   :  { %s2428_s12 = smov 0   ;;  %s2837_s0 = inlined_call_operand.vmem [shape: f32[2,10,10,128], index: 0, kind: input, shape index: {}]   ;;  %s2838_s1 = inlined_call_operand.vmem [shape: bf16[3,3,128,128], index: 1, kind: input, shape index: {}]   ;;  %s2839_s2 = inlined_call_operand.vmem [shape: bf16[2,64,128], index: 2, kind: output, shape index: {0}]   ;;  %s2840_s3 = inlined_call_operand.vmem [shape: f32[2,2,128], index: 3, kind: output, shape index: {1}]  }
   0x1 LB: > { %s1680_s13 = sadd.s32 4294967295, %s2406_s12   ;;  %p1684_p0 = scmp.ge.s32.totalorder %s2406_s12, 1  ;;  %s2406_s12 = sphi %s2428_s12, %s14_s12  }
   0x2   : > { %p140_p1 = scmp.lt.s32.totalorder %s2406_s12, 3 }
   0x4   : > { %p141_p2 = pnand %p1684_p0, %p140_p1 }
   0x6   : > { %144 = sbr.rel (%p141_p2) target bundleno = 402 (0x192), region = 28 }
   0xb   : > { %v2328_v0 = vld [vmem:[%s2838_s1 + $0x78] sm:$0xff]   ;;  %p168_p3 = scmp.lt.s32.totalorder %s1680_s13, 1  ;;  %v2330_v2 = vld [vmem:[%s2838_s1 + $0x70] sm:$0xff]   ;;  %v2332_v4 = vld [vmem:[%s2838_s1 + $0x68] sm:$0xff]  }
   0xc   : > { %v2329_v1 = vld [vmem:[%s2838_s1 + $0x38] sm:$0xff]   ;;  %2087 = vmatprep.subr.bf16.mxu0 %v2328_v0  ;;  %v2331_v3 = vld [vmem:[%s2838_s1 + $0x30] sm:$0xff]   ;;  %v2333_v5 = vld [vmem:[%s2838_s1 + $0x28] sm:$0xff]  }
   0xd   : > { %2111 = vmatprep.subr.bf16.mxu1 %v2329_v1  ;;  %2088 = vmatpush3.bf16.msra.mxu0 %v2328_v0  ;;  %s2850_s13 = smov (!%p168_p3, %s1680_s13), 1  ;;  %v2334_v6 = vld [vmem:[%s2838_s1 + $0x60] sm:$0xff]   ;;  %v2336_v8 = vld [vmem:[%s2838_s1 + $0x58] sm:$0xff]   ;;  %v2338_v10 = vld [vmem:[%s2838_s1 + $0x50] sm:$0xff]  }
   0xe   : > { %2112 = vmatpush3.bf16.msra.mxu1 %v2329_v1  ;;  %2089 = vmatprep.subr.bf16.mxu0 %v2330_v2  ;;  %v2335_v7 = vld [vmem:[%s2838_s1 + $0x20] sm:$0xff]   ;;  %s2319_s30 = smul.u32 160, %s2850_s13  ;;  %v2337_v9 = vld [vmem:[%s2838_s1 + $0x18] sm:$0xff]   ;;  %v2339_v14 = vld [vmem:[%s2838_s1 + $0x10] sm:$0xff]   ;;  %s1688_s20 = sshll.u32 %s2850_s13, 1 }
   0xf   : > { %2113 = vmatprep.subr.bf16.mxu1 %v2331_v3  ;;  %v2340_v18 = vld [vmem:[%s2838_s1 + $0x48] sm:$0xff]   ;;  %v2342_v20 = vld [vmem:[%s2838_s1 + $0x40] sm:$0xff]   ;;  %v2344_v26 = vld [vmem:[%s2838_s1 + $0xb8] sm:$0xff]   ;;  %s181_s23 = scalar_lea.vmem %s2840_s3, %s1688_s20 }
  0x10   : > { %s2472_s10 = scalar_lea.vmem %s2837_s0, %s2319_s30  ;;  %v2341_v19 = vld [vmem:[%s2838_s1 + $0x8] sm:$0xff]   ;;  %v2343_v21 = vld [vmem:[%s2838_s1] sm:$0xff]   ;;  %v2345_v27 = vld [vmem:[%s2838_s1 + $0xf8] sm:$0xff]  }
  0x11   : > { %2090 = vmatpush3.bf16.msra.mxu0 %v2330_v2  ;;  %v211_v11 = vld [vmem:[%s2472_s10 + $0x1] sm:$0xff]  ;;  %v2479_v12 = vld [vmem:[%s2472_s10 + $0x11] sm:$0xff] }
  0x12   : > { %2114 = vmatpush3.bf16.msra.mxu1 %v2331_v3  ;;  %2091 = vmatprep.subr.bf16.mxu0 %v2332_v4  ;;  %v183_v13 = vld [vmem:[%s2472_s10] sm:$0xff]  ;;  %v219_v15 = vpack.c.bf16 %v2479_v12, %v211_v11  ;;  %v2487_v16 = vld [vmem:[%s2472_s10 + $0x10] sm:$0xff]  ;;  %v2348_v38 = vld [vmem:[%s2838_s1 + $0xa8] sm:$0xff]  }
  0x13   : > { %2115 = vmatprep.subr.bf16.mxu1 %v2333_v5  ;;  %v191_v17 = vpack.c.bf16 %v2487_v16, %v183_v13  ;;  %v2503_v22 = vld [vmem:[%s2472_s10 + $0x21] sm:$0xff]  ;;  %v2506_v23 = vld [vmem:[%s2472_s10 + $0x31] sm:$0xff] }
  0x14   : > { %2103 = vmatprep.mubr.bf16.mxu0 %v219_v15  ;;  %v185_v24 = vld [vmem:[%s2472_s10 + $0x20] sm:$0xff]  ;;  %v2510_v25 = vld [vmem:[%s2472_s10 + $0x30] sm:$0xff]  ;;  %v2520_v28 = vpack.c.bf16 %v2506_v23, %v2503_v22  ;;  %v2349_v43 = vld [vmem:[%s2838_s1 + $0xe8] sm:$0xff]  }
  0x15   : > { %2092 = vmatpush3.bf16.msra.mxu0 %v2332_v4  ;;  %2127 = vmatprep.mubr.bf16.mxu1 %v191_v17  ;;  %v2346_v29 = vld [vmem:[%s2838_s1 + $0xb0] sm:$0xff]   ;;  %v2526_v30 = vld [vmem:[%s2472_s10 + $0x41] sm:$0xff]  ;;  %v2535_v33 = vpack.c.bf16 %v2510_v25, %v185_v24  ;;  %v625_v51 = vpack.c.bf16 %v185_v24, %v2487_v16  ;;  %v2352_v52 = vld [vmem:[%s2838_s1 + $0x98] sm:$0xff]  }
  0x16   : > { %2116 = vmatpush3.bf16.msra.mxu1 %v2333_v5  ;;  %2093 = vmatprep.subr.bf16.mxu0 %v2334_v6  ;;  %v2529_v31 = vld [vmem:[%s2472_s10 + $0x51] sm:$0xff]  ;;  %v2532_v32 = vld [vmem:[%s2472_s10 + $0x40] sm:$0xff]  ;;  %v2356_v56 = vld [vmem:[%s2838_s1 + $0x88] sm:$0xff]  }
  0x17   : > { %2117 = vmatprep.subr.bf16.mxu1 %v2335_v7  ;;  %v2538_v34 = vld [vmem:[%s2472_s10 + $0x50] sm:$0xff]  ;;  %v2545_v36 = vpack.c.bf16 %v2529_v31, %v2526_v30  ;;  %v2548_v37 = vld [vmem:[%s2472_s10 + $0x61] sm:$0xff]  ;;  %v2353_v53 = vld [vmem:[%s2838_s1 + $0xd8] sm:$0xff]   ;;  %v626_v3 = vpack.c.bf16 %v2532_v32, %v2510_v25 }
  0x18   : > { %v2347_v35 = vld [vmem:[%s2838_s1 + $0xf0] sm:$0xff]   ;;  %v2556_v39 = vpack.c.bf16 %v2538_v34, %v2532_v32  ;;  %v2563_v41 = vld [vmem:[%s2472_s10 + $0x60] sm:$0xff]  ;;  %v2357_v57 = vld [vmem:[%s2838_s1 + $0xc8] sm:$0xff]  }
  0x19   : > { %2094 = vmatpush3.bf16.msra.mxu0 %v2334_v6  ;;  %v2559_v40 = vld [vmem:[%s2472_s10 + $0x71] sm:$0xff]  ;;  %v466_v45 = vld [vmem:[%s2472_s10 + $0x2] sm:$0xff] }
  0x1a   : > { %2118 = vmatpush3.bf16.msra.mxu1 %v2335_v7  ;;  %2095 = vmatprep.subr.bf16.mxu0 %v2336_v8  ;;  %v2566_v42 = vld [vmem:[%s2472_s10 + $0x70] sm:$0xff]  ;;  %v2575_v44 = vpack.c.bf16 %v2559_v40, %v2548_v37  ;;  %v2350_v48 = vld [vmem:[%s2838_s1 + $0xa0] sm:$0xff]   ;;  %v2360_v62 = vld [vmem:[%s2838_s1 + $0x138] sm:$0xff]  }
  0x1b   : > { %2119 = vmatprep.subr.bf16.mxu1 %v2337_v9  ;;  %v2579_v46 = vld [vmem:[%s2472_s10 + $0x12] sm:$0xff]  ;;  %v2583_v47 = vpack.c.bf16 %v2566_v42, %v2563_v41  ;;  %v2351_v49 = vld [vmem:[%s2838_s1 + $0xe0] sm:$0xff]   ;;  %v2365_v13 = vld [vmem:[%s2838_s1 + $0x168] sm:$0xff]  }
  0x1c   : > { %v474_v50 = vpack.c.bf16 %v2579_v46, %v466_v45  ;;  %v2354_v54 = vld [vmem:[%s2838_s1 + $0x90] sm:$0xff]   ;;  %v2358_v58 = vld [vmem:[%s2838_s1 + $0x80] sm:$0xff]   ;;  %v2361_v63 = vld [vmem:[%s2838_s1 + $0x178] sm:$0xff]  }
  0x1d   : > { %2096 = vmatpush3.bf16.msra.mxu0 %v2336_v8  ;;  %v2355_v55 = vld [vmem:[%s2838_s1 + $0xd0] sm:$0xff]   ;;  %v2359_v59 = vld [vmem:[%s2838_s1 + $0xc0] sm:$0xff]   ;;  %v2372_v24 = vld [vmem:[%s2838_s1 + $0x108] sm:$0xff]  }
  0x1e   : > { %2120 = vmatpush3.bf16.msra.mxu1 %v2337_v9  ;;  %2097 = vmatprep.subr.bf16.mxu0 %v2338_v10  ;;  %v468_v60 = vld [vmem:[%s2472_s10 + $0x22] sm:$0xff]  ;;  %v2621_v61 = vld [vmem:[%s2472_s10 + $0x32] sm:$0xff]  ;;  %v627_v9 = vpack.c.bf16 %v2563_v41, %v2538_v34  ;;  %v776_v34 = vpack.c.bf16 %v2526_v30, %v2506_v23 }
  0x1f   : > { %2121 = vmatprep.subr.bf16.mxu1 %v2339_v14  ;;  %v2630_v0 = vpack.c.bf16 %v2621_v61, %v468_v60  ;;  %v2633_v1 = vld [vmem:[%s2472_s10 + $0x42] sm:$0xff]  ;;  %v2636_v2 = vld [vmem:[%s2472_s10 + $0x52] sm:$0xff] }
  0x20   : > { %v2362_v4 = vld [vmem:[%s2838_s1 + $0x130] sm:$0xff]   ;;  %v2648_v6 = vpack.c.bf16 %v2636_v2, %v2633_v1  ;;  %v2651_v7 = vld [vmem:[%s2472_s10 + $0x62] sm:$0xff]  ;;  %v2377_v32 = vld [vmem:[%s2838_s1 + $0x1f8] sm:$0xff]  }
  0x21   : > { %2098 = vmatpush3.bf16.msra.mxu0 %v2338_v10  ;;  %v2363_v5 = vld [vmem:[%s2838_s1 + $0x170] sm:$0xff]   ;;  %v2364_v10 = vld [vmem:[%s2838_s1 + $0x128] sm:$0xff]   ;;  %v2663_v11 = vld [vmem:[%s2472_s10 + $0x80] sm:$0xff]  ;;  %v927_v23 = vpack.c.bf16 %v2651_v7, %v2636_v2 }
  0x22   : > { %2122 = vmatpush3.bf16.msra.mxu1 %v2339_v14  ;;  %2099 = vmatprep.subr.bf16.mxu0 %v2340_v18  ;;  %v2655_v8 = vld [vmem:[%s2472_s10 + $0x72] sm:$0xff]  ;;  %v628_v15 = vpack.c.bf16 %v2663_v11, %v2566_v42  ;;  %v2366_v16 = vld [vmem:[%s2838_s1 + $0x120] sm:$0xff]   ;;  %v2373_v25 = vld [vmem:[%s2838_s1 + $0x148] sm:$0xff]   ;;  %v777_v42 = vpack.c.bf16 %v2548_v37, %v2529_v31 }
  0x23   : > { %2123 = vmatprep.subr.bf16.mxu1 %v2341_v19  ;;  %v2671_v14 = vpack.c.bf16 %v2655_v8, %v2651_v7  ;;  %v2367_v17 = vld [vmem:[%s2838_s1 + $0x160] sm:$0xff]   ;;  %v2379_v41 = vld [vmem:[%s2838_s1 + $0x1f0] sm:$0xff]   ;;  %v2381_v31 = vld [vmem:[%s2838_s1 + $0x1e8] sm:$0xff]  }
  0x24   : > { %v2730_v30 = vld [vmem:[%s2472_s10 + $0x81] sm:$0xff] }
  0x25   : > { %2100 = vmatpush3.bf16.msra.mxu0 %v2340_v18  ;;  %v775_v18 = vpack.c.bf16 %v2503_v22, %v2479_v12  ;;  %v2370_v12 = vld [vmem:[%s2838_s1 + $0x110] sm:$0xff]   ;;  %v2736_v45 = vld [vmem:[%s2472_s10 + $0x82] sm:$0xff]  ;;  %v778_v37 = vpack.c.bf16 %v2730_v30, %v2559_v40  ;;  %v2384_v40 = vld [vmem:[%s2838_s1 + $0x198] sm:$0xff]  }
  0x26   : > { %2124 = vmatpush3.bf16.msra.mxu1 %v2341_v19  ;;  %2101 = vmatprep.subr.bf16.mxu0 %v2342_v20  ;;  %v925_v19 = vpack.c.bf16 %v468_v60, %v2579_v46  ;;  %v2371_v22 = vld [vmem:[%s2838_s1 + $0x150] sm:$0xff]   ;;  %v928_v46 = vpack.c.bf16 %v2736_v45, %v2655_v8 }
  0x27   : > { %2125 = vmatprep.subr.bf16.mxu1 %v2343_v21 }
  0x29   : > { %2102 = vmatpush3.bf16.msra.mxu0 %v2342_v20  ;;  %v2368_v20 = vld [vmem:[%s2838_s1 + $0x118] sm:$0xff]  }
  0x2a   : > { %2126 = vmatpush3.bf16.msra.mxu1 %v2343_v21  ;;  %2135 = vmatprep.subr.bf16.mxu0 %v2344_v26  ;;  %v2369_v21 = vld [vmem:[%s2838_s1 + $0x158] sm:$0xff]  }
  0x2b   : > { %2159 = vmatprep.subr.bf16.mxu1 %v2345_v27 }
  0x2c   : > { %2104 = vmatmul.mubr.bf16.vlgmr.msra.gmra.mxu0 %v2520_v28 }
  0x2d   : > { %2128 = vmatmul.mubr.bf16.vlgmr.msra.gmra.mxu1 %v2535_v33  ;;  %2136 = vmatpush3.bf16.msra.mxu0 %v2344_v26  ;;  %v2374_v26 = vld [vmem:[%s2838_s1 + $0x100] sm:$0xff]  }
  0x2e   : > { %2160 = vmatpush3.bf16.msra.mxu1 %v2345_v27  ;;  %2137 = vmatprep.subr.bf16.mxu0 %v2346_v29  ;;  %v2375_v27 = vld [vmem:[%s2838_s1 + $0x140] sm:$0xff]  }
  0x2f   : > { %2161 = vmatprep.subr.bf16.mxu1 %v2347_v35  ;;  %2107 = vmatprep.mubr.bf16.mxu0 %v2545_v36 }
  0x30   : > { %2131 = vmatprep.mubr.bf16.mxu1 %v2556_v39 }
  0x31   : > { %2138 = vmatpush3.bf16.msra.mxu0 %v2346_v29  ;;  %v2376_v29 = vld [vmem:[%s2838_s1 + $0x1b8] sm:$0xff]  }
  0x32   : > { %2162 = vmatpush3.bf16.msra.mxu1 %v2347_v35  ;;  %2139 = vmatprep.subr.bf16.mxu0 %v2348_v38  ;;  %v926_v35 = vpack.c.bf16 %v2633_v1, %v2621_v61  ;;  %v2398_v61 = vld [vmem:[%s2838_s1 + $0x208] sm:$0xff]  }
  0x33   : > { %2163 = vmatprep.subr.bf16.mxu1 %v2349_v43 }
  0x34   : > { %2108 = vmatmul.mubr.bf16.gmra.mxu0 %v2575_v44 }
  0x35   : > { %2140 = vmatpush3.bf16.msra.mxu0 %v2348_v38  ;;  %2132 = vmatmul.mubr.bf16.gmra.mxu1 %v2583_v47  ;;  %v2378_v38 = vld [vmem:[%s2838_s1 + $0x1b0] sm:$0xff]  }
  0x36   : > { %2164 = vmatpush3.bf16.msra.mxu1 %v2349_v43  ;;  %2141 = vmatprep.subr.bf16.mxu0 %v2350_v48  ;;  %v2380_v43 = vld [vmem:[%s2838_s1 + $0x1a8] sm:$0xff]  }
  0x37   : > { %2165 = vmatprep.subr.bf16.mxu1 %v2351_v49  ;;  %2151 = vmatprep.mubr.bf16.mxu0 %v474_v50  ;;  %v2385_v50 = vld [vmem:[%s2838_s1 + $0x1d8] sm:$0xff]  }
  0x38   : > { %2175 = vmatprep.mubr.bf16.mxu1 %v625_v51  ;;  %v2386_v51 = vld [vmem:[%s2838_s1 + $0x190] sm:$0xff]  }
  0x39   : > { %2142 = vmatpush3.bf16.msra.mxu0 %v2350_v48  ;;  %v2382_v48 = vld [vmem:[%s2838_s1 + $0x1a0] sm:$0xff]  }
  0x3a   : > { %2166 = vmatpush3.bf16.msra.mxu1 %v2351_v49  ;;  %2143 = vmatprep.subr.bf16.mxu0 %v2352_v52  ;;  %v2383_v49 = vld [vmem:[%s2838_s1 + $0x1e0] sm:$0xff]  }
  0x3b   : > { %2167 = vmatprep.subr.bf16.mxu1 %v2353_v53 }
  0x3d   : > { %2144 = vmatpush3.bf16.msra.mxu0 %v2352_v52  ;;  %v2387_v52 = vld [vmem:[%s2838_s1 + $0x1d0] sm:$0xff]  }
  0x3e   : > { %2168 = vmatpush3.bf16.msra.mxu1 %v2353_v53  ;;  %2145 = vmatprep.subr.bf16.mxu0 %v2354_v54  ;;  %v2390_v53 = vld [vmem:[%s2838_s1 + $0x180] sm:$0xff]  }
  0x3f   : > { %2169 = vmatprep.subr.bf16.mxu1 %v2355_v55 }
  0x41   : > { %2146 = vmatpush3.bf16.msra.mxu0 %v2354_v54  ;;  %v2391_v54 = vld [vmem:[%s2838_s1 + $0x1c0] sm:$0xff]  }
  0x42   : > { %2170 = vmatpush3.bf16.msra.mxu1 %v2355_v55  ;;  %2147 = vmatprep.subr.bf16.mxu0 %v2356_v56  ;;  %v2392_v55 = vld [vmem:[%s2838_s1 + $0x238] sm:$0xff]  }
  0x43   : > { %2171 = vmatprep.subr.bf16.mxu1 %v2357_v57 }
  0x45   : > { %2148 = vmatpush3.bf16.msra.mxu0 %v2356_v56  ;;  %v2393_v56 = vld [vmem:[%s2838_s1 + $0x230] sm:$0xff]  }
  0x46   : > { %2172 = vmatpush3.bf16.msra.mxu1 %v2357_v57  ;;  %2149 = vmatprep.subr.bf16.mxu0 %v2358_v58  ;;  %v1848_v57 = vld [vmem:[%s2472_s10 + $0x90] sm:$0xff] }
  0x47   : > { %2173 = vmatprep.subr.bf16.mxu1 %v2359_v59  ;;  %v1079_v60 = vpack.c.bf16 %v1848_v57, %v2663_v11 }
  0x49   : > { %2150 = vmatpush3.bf16.msra.mxu0 %v2358_v58  ;;  %v2394_v58 = vld [vmem:[%s2838_s1 + $0x228] sm:$0xff]  }
  0x4a   : > { %2174 = vmatpush3.bf16.msra.mxu1 %v2359_v59  ;;  %2183 = vmatprep.subr.bf16.mxu0 %v2360_v62  ;;  %v1880_v59 = vld [vmem:[%s2472_s10 + $0x91] sm:$0xff] }
  0x4b   : > { %2207 = vmatprep.subr.bf16.mxu1 %v2361_v63 }
  0x4c   : > { %2152 = vmatmul.mubr.bf16.vlgmr.msra.gmra.mxu0 %v2630_v0 }
  0x4d   : > { %2176 = vmatmul.mubr.bf16.vlgmr.msra.gmra.mxu1 %v626_v3  ;;  %2184 = vmatpush3.bf16.msra.mxu0 %v2360_v62  ;;  %v2399_v62 = vld [vmem:[%s2838_s1 + $0x200] sm:$0xff]  }
  0x4e   : > { %2208 = vmatpush3.bf16.msra.mxu1 %v2361_v63  ;;  %2185 = vmatprep.subr.bf16.mxu0 %v2362_v4  ;;  %v1912_v63 = vld [vmem:[%s2472_s10 + $0x92] sm:$0xff]  ;;  %s1947_s10 = sshll.u32 %s2850_s13, 5 }
  0x4f   : > { %2209 = vmatprep.subr.bf16.mxu1 %v2363_v5  ;;  %2155 = vmatprep.mubr.bf16.mxu0 %v2648_v6  ;;  %s177_s19 = scalar_lea.vmem %s2839_s2, %s1947_s10 }
  0x50   : > { %2179 = vmatprep.mubr.bf16.mxu1 %v627_v9 }
  0x51   : > { %2186 = vmatpush3.bf16.msra.mxu0 %v2362_v4 }
  0x52   : > { %2210 = vmatpush3.bf16.msra.mxu1 %v2363_v5  ;;  %2187 = vmatprep.subr.bf16.mxu0 %v2364_v10 }
  0x53   : > { %2211 = vmatprep.subr.bf16.mxu1 %v2365_v13 }
  0x54   : > { %2156 = vmatmul.mubr.bf16.gmra.mxu0 %v2671_v14 }
  0x55   : > { %2188 = vmatpush3.bf16.msra.mxu0 %v2364_v10  ;;  %2180 = vmatmul.mubr.bf16.gmra.mxu1 %v628_v15 }
  0x56   : > { %2212 = vmatpush3.bf16.msra.mxu1 %v2365_v13  ;;  %2189 = vmatprep.subr.bf16.mxu0 %v2366_v16 }
  0x57   : > { %2213 = vmatprep.subr.bf16.mxu1 %v2367_v17  ;;  %2199 = vmatprep.mubr.bf16.mxu0 %v775_v18 }
  0x58   : > { %2223 = vmatprep.mubr.bf16.mxu1 %v925_v19 }
  0x59   : > { %2190 = vmatpush3.bf16.msra.mxu0 %v2366_v16 }
  0x5a   : > { %2214 = vmatpush3.bf16.msra.mxu1 %v2367_v17  ;;  %2191 = vmatprep.subr.bf16.mxu0 %v2368_v20 }
  0x5b   : > { %2215 = vmatprep.subr.bf16.mxu1 %v2369_v21 }
  0x5d   : > { %2192 = vmatpush3.bf16.msra.mxu0 %v2368_v20 }
  0x5e   : > { %2216 = vmatpush3.bf16.msra.mxu1 %v2369_v21  ;;  %2193 = vmatprep.subr.bf16.mxu0 %v2370_v12 }
  0x5f   : > { %2217 = vmatprep.subr.bf16.mxu1 %v2371_v22 }
  0x61   : > { %2194 = vmatpush3.bf16.msra.mxu0 %v2370_v12 }
  0x62   : > { %2218 = vmatpush3.bf16.msra.mxu1 %v2371_v22  ;;  %2195 = vmatprep.subr.bf16.mxu0 %v2372_v24 }
  0x63   : > { %2219 = vmatprep.subr.bf16.mxu1 %v2373_v25 }
  0x65   : > { %2196 = vmatpush3.bf16.msra.mxu0 %v2372_v24 }
  0x66   : > { %2220 = vmatpush3.bf16.msra.mxu1 %v2373_v25  ;;  %2197 = vmatprep.subr.bf16.mxu0 %v2374_v26 }
  0x67   : > { %2221 = vmatprep.subr.bf16.mxu1 %v2375_v27 }
  0x69   : > { %2198 = vmatpush3.bf16.msra.mxu0 %v2374_v26 }
  0x6a   : > { %2222 = vmatpush3.bf16.msra.mxu1 %v2375_v27  ;;  %2231 = vmatprep.subr.bf16.mxu0 %v2376_v29 }
  0x6b   : > { %2255 = vmatprep.subr.bf16.mxu1 %v2377_v32 }
  0x6c   : > { %2200 = vmatmul.mubr.bf16.vlgmr.msra.gmra.mxu0 %v776_v34 }
  0x6d   : > { %2224 = vmatmul.mubr.bf16.vlgmr.msra.gmra.mxu1 %v926_v35  ;;  %2232 = vmatpush3.bf16.msra.mxu0 %v2376_v29 }
  0x6e   : > { %2256 = vmatpush3.bf16.msra.mxu1 %v2377_v32  ;;  %2233 = vmatprep.subr.bf16.mxu0 %v2378_v38 }
  0x6f   : > { %2257 = vmatprep.subr.bf16.mxu1 %v2379_v41  ;;  %2203 = vmatprep.mubr.bf16.mxu0 %v777_v42 }
  0x70   : > { %2227 = vmatprep.mubr.bf16.mxu1 %v927_v23 }
  0x71   : > { %2234 = vmatpush3.bf16.msra.mxu0 %v2378_v38 }
  0x72   : > { %2258 = vmatpush3.bf16.msra.mxu1 %v2379_v41  ;;  %2235 = vmatprep.subr.bf16.mxu0 %v2380_v43 }
  0x73   : > { %2259 = vmatprep.subr.bf16.mxu1 %v2381_v31 }
  0x74   : > { %2204 = vmatmul.mubr.bf16.gmra.mxu0 %v778_v37 }
  0x75   : > { %2236 = vmatpush3.bf16.msra.mxu0 %v2380_v43  ;;  %2228 = vmatmul.mubr.bf16.gmra.mxu1 %v928_v46 }
  0x76   : > { %2260 = vmatpush3.bf16.msra.mxu1 %v2381_v31  ;;  %2237 = vmatprep.subr.bf16.mxu0 %v2382_v48 }
  0x77   : > { %2261 = vmatprep.subr.bf16.mxu1 %v2383_v49  ;;  %2247 = vmatprep.mubr.bf16.mxu0 %v2535_v33  ;;  %v2388_v33 = vld [vmem:[%s2838_s1 + $0x188] sm:$0xff]  }
  0x78   : > { %2271 = vmatprep.mubr.bf16.mxu1 %v2520_v28  ;;  %v2389_v28 = vld [vmem:[%s2838_s1 + $0x1c8] sm:$0xff]  }
  0x79   : > { %2238 = vmatpush3.bf16.msra.mxu0 %v2382_v48 }
  0x7a   : > { %2262 = vmatpush3.bf16.msra.mxu1 %v2383_v49  ;;  %2239 = vmatprep.subr.bf16.mxu0 %v2384_v40 }
  0x7b   : > { %2263 = vmatprep.subr.bf16.mxu1 %v2385_v50 }
  0x7d   : > { %2240 = vmatpush3.bf16.msra.mxu0 %v2384_v40 }
  0x7e   : > { %2264 = vmatpush3.bf16.msra.mxu1 %v2385_v50  ;;  %2241 = vmatprep.subr.bf16.mxu0 %v2386_v51 }
  0x7f   : > { %2265 = vmatprep.subr.bf16.mxu1 %v2387_v52 }
  0x81   : > { %2242 = vmatpush3.bf16.msra.mxu0 %v2386_v51 }
  0x82   : > { %2266 = vmatpush3.bf16.msra.mxu1 %v2387_v52  ;;  %2243 = vmatprep.subr.bf16.mxu0 %v2388_v33 }
  0x83   : > { %2267 = vmatprep.subr.bf16.mxu1 %v2389_v28 }
  0x85   : > { %2244 = vmatpush3.bf16.msra.mxu0 %v2388_v33 }
  0x86   : > { %2268 = vmatpush3.bf16.msra.mxu1 %v2389_v28  ;;  %2245 = vmatprep.subr.bf16.mxu0 %v2390_v53 }
  0x87   : > { %2269 = vmatprep.subr.bf16.mxu1 %v2391_v54 }
  0x89   : > { %2246 = vmatpush3.bf16.msra.mxu0 %v2390_v53 }
  0x8a   : > { %2270 = vmatpush3.bf16.msra.mxu1 %v2391_v54  ;;  %2279 = vmatprep.subr.bf16.mxu0 %v2392_v55 }
  0x8b   : > { %2303 = vmatprep.subr.bf16.mxu1 %v2392_v55 }
  0x8c   : > { %2248 = vmatmul.mubr.bf16.vlgmr.msra.gmra.mxu0 %v2556_v39  ;;  %v1229_v39 = vpack.c.bf16 %v1880_v59, %v2730_v30 }
  0x8d   : > { %2272 = vmatmul.mubr.bf16.vlgmr.msra.gmra.mxu1 %v2545_v36  ;;  %2280 = vmatpush3.bf16.msra.mxu0 %v2392_v55  ;;  %v2395_v36 = vld [vmem:[%s2838_s1 + $0x220] sm:$0xff]  }
  0x8e   : > { %2311 = vmatpush3.bf16.msra.mxu1 %v2392_v55  ;;  %2281 = vmatprep.subr.bf16.mxu0 %v2393_v56 }
  0x8f   : > { %2304 = vmatprep.subr.bf16.mxu1 %v2393_v56  ;;  %2251 = vmatprep.mubr.bf16.mxu0 %v2583_v47  ;;  %v2396_v47 = vld [vmem:[%s2838_s1 + $0x218] sm:$0xff]  }
  0x90   : > { %2275 = vmatprep.mubr.bf16.mxu1 %v2575_v44  ;;  %v2397_v44 = vld [vmem:[%s2838_s1 + $0x210] sm:$0xff]  }
  0x91   : > { %2282 = vmatpush3.bf16.msra.mxu0 %v2393_v56 }
  0x92   : > { %2312 = vmatpush3.bf16.msra.mxu1 %v2393_v56  ;;  %2283 = vmatprep.subr.bf16.mxu0 %v2394_v58 }
  0x93   : > { %2305 = vmatprep.subr.bf16.mxu1 %v2394_v58 }
  0x94   : > { %2252 = vmatmul.mubr.bf16.gmra.mxu0 %v1079_v60 }
  0x95   : > { %2284 = vmatpush3.bf16.msra.mxu0 %v2394_v58  ;;  %2276 = vmatmul.mubr.bf16.gmra.mxu1 %v1229_v39 }
  0x96   : > { %2313 = vmatpush3.bf16.msra.mxu1 %v2394_v58  ;;  %2285 = vmatprep.subr.bf16.mxu0 %v2395_v36 }
  0x97   : > { %2306 = vmatprep.subr.bf16.mxu1 %v2395_v36  ;;  %2295 = vmatprep.mubr.bf16.mxu0 %v2630_v0  ;;  %v1379_v0 = vpack.c.bf16 %v1912_v63, %v2736_v45 }
  0x98   : > { %2299 = vmatprep.mubr.bf16.mxu1 %v2671_v14 }
  0x99   : > { %2286 = vmatpush3.bf16.msra.mxu0 %v2395_v36 }
  0x9a   : > { %2314 = vmatpush3.bf16.msra.mxu1 %v2395_v36  ;;  %2287 = vmatprep.subr.bf16.mxu0 %v2396_v47 }
  0x9b   : > { %2307 = vmatprep.subr.bf16.mxu1 %v2396_v47 }
  0x9d   : > { %2288 = vmatpush3.bf16.msra.mxu0 %v2396_v47 }
  0x9e   : > { %2315 = vmatpush3.bf16.msra.mxu1 %v2396_v47  ;;  %2289 = vmatprep.subr.bf16.mxu0 %v2397_v44 }
  0x9f   : > { %2308 = vmatprep.subr.bf16.mxu1 %v2397_v44 }
  0xa1   : > { %2290 = vmatpush3.bf16.msra.mxu0 %v2397_v44 }
  0xa2   : > { %2316 = vmatpush3.bf16.msra.mxu1 %v2397_v44  ;;  %2291 = vmatprep.subr.bf16.mxu0 %v2398_v61 }
  0xa3   : > { %2309 = vmatprep.subr.bf16.mxu1 %v2398_v61 }
  0xa5   : > { %2292 = vmatpush3.bf16.msra.mxu0 %v2398_v61 }
  0xa6   : > { %2317 = vmatpush3.bf16.msra.mxu1 %v2398_v61  ;;  %2293 = vmatprep.subr.bf16.mxu0 %v2399_v62 }
  0xa7   : > { %2310 = vmatprep.subr.bf16.mxu1 %v2399_v62 }
  0xa9   : > { %2294 = vmatpush3.bf16.msra.mxu0 %v2399_v62 }
  0xaa   : > { %2318 = vmatpush3.bf16.msra.mxu1 %v2399_v62 }
  0xac   : > { %2296 = vmatmul.mubr.bf16.vlgmr.msra.gmra.mxu0 %v2648_v6 }
  0xad   : > { %2300 = vmatmul.mubr.bf16.vlgmr.msra.gmra.mxu1 %v1379_v0 }
  0xec   : > { %v2105_v1 = vpop.f32.mrf.mxu0 }
  0xed   : > { %v2129_v2 = vpop.f32.mrf.mxu1 }
  0xee   : > { %v322_v3 = vpop.f32.mrf.mxu0  ;;  %v444_v39 = vadd.f32 %v2129_v2, %v2105_v1 }
  0xef   : > { %v435_v4 = vpop.f32.mrf.mxu1 }
  0xf0   : > { %v2106_v5 = vpop.f32.mrf.mxu0  ;;  %v436_v36 = vadd.f32 %v435_v4, %v322_v3 }
  0xf1   : > { %v2130_v7 = vpop.f32.mrf.mxu1 }
  0xf2   : > { %v325_v8 = vpop.f32.mrf.mxu0  ;;  %v447_v47 = vadd.f32 %v2130_v7, %v2106_v5 }
  0xf3   : > { %v438_v9 = vpop.f32.mrf.mxu1 }
  0xf4   : > { %v2109_v10 = vpop.f32.mrf.mxu0  ;;  %v439_v63 = vadd.f32 %v438_v9, %v325_v8 }
  0xf5   : > { %v2133_v11 = vpop.f32.mrf.mxu1 }
  0xf6   : > { %v338_v13 = vpop.f32.mrf.mxu0  ;;  %v460_v44 = vadd.f32 %v2133_v11, %v2109_v10 }
  0xf7   : > { %v451_v14 = vpop.f32.mrf.mxu1 }
  0xf8   : > { %v2110_v15 = vpop.f32.mrf.mxu0 }
  0xf9   : > { %v2134_v16 = vpop.f32.mrf.mxu1 }
  0xfa   : > { %v341_v17 = vpop.f32.mrf.mxu0  ;;  %v463_v61 = vadd.f32 %v2134_v16, %v2110_v15 }
  0xfb   : > { %v454_v18 = vpop.f32.mrf.mxu1 }
  0xfc   : > { %v455_v1 = vadd.f32 %v454_v18, %v341_v17 }
 0x10c   : > { %v2153_v19 = vpop.f32.mrf.mxu0 }
 0x10d   : > { %v2177_v20 = vpop.f32.mrf.mxu1  ;;  %v610_v0 = vadd.f32 %v2153_v19, %v444_v39 }
 0x10e   : > { %v577_v6 = vpop.f32.mrf.mxu0 }
 0x10f   : > { %v728_v21 = vpop.f32.mrf.mxu1  ;;  %v761_v11 = vadd.f32 %v2177_v20, %v610_v0 }
 0x110   : > { %v2154_v12 = vpop.f32.mrf.mxu0 }
 0x111   : > { %v2178_v22 = vpop.f32.mrf.mxu1 }
 0x112   : > { %v580_v24 = vpop.f32.mrf.mxu0 }
 0x113   : > { %v731_v25 = vpop.f32.mrf.mxu1  ;;  %v609_v4 = vadd.f32 %v580_v24, %v439_v63 }
 0x114   : > { %v2157_v26 = vpop.f32.mrf.mxu0 }
 0x115   : > { %v2181_v27 = vpop.f32.mrf.mxu1  ;;  %v614_v2 = vadd.f32 %v2157_v26, %v460_v44  ;;  %v760_v39 = vadd.f32 %v731_v25, %v609_v4 }
 0x116   : > { %v593_v29 = vpop.f32.mrf.mxu0 }
 0x117   : > { %v744_v32 = vpop.f32.mrf.mxu1  ;;  %v765_v9 = vadd.f32 %v2181_v27, %v614_v2 }
 0x118   : > { %v2158_v34 = vpop.f32.mrf.mxu0 }
 0x119   : > { %v2182_v35 = vpop.f32.mrf.mxu1  ;;  %v615_v3 = vadd.f32 %v2158_v34, %v463_v61 }
 0x11a   : > { %v596_v38 = vpop.f32.mrf.mxu0 }
 0x11b   : > { %v747_v41 = vpop.f32.mrf.mxu1  ;;  %v613_v7 = vadd.f32 %v596_v38, %v455_v1  ;;  %v766_v19 = vadd.f32 %v2182_v35, %v615_v3 }
 0x12c   : > { %v2201_v42 = vpop.f32.mrf.mxu0 }
 0x12d   : > { %v2225_v23 = vpop.f32.mrf.mxu1 }
 0x12e   : > { %v878_v30 = vpop.f32.mrf.mxu0 }
 0x12f   : > { %v1028_v43 = vpop.f32.mrf.mxu1 }
 0x130   : > { %v2202_v45 = vpop.f32.mrf.mxu0 }
 0x131   : > { %v2226_v31 = vpop.f32.mrf.mxu1 }
 0x132   : > { %v881_v37 = vpop.f32.mrf.mxu0 }
 0x133   : > { %v1031_v46 = vpop.f32.mrf.mxu1  ;;  %v910_v26 = vadd.f32 %v881_v37, %v760_v39 }
 0x134   : > { %v2205_v48 = vpop.f32.mrf.mxu0 }
 0x135   : > { %v2229_v49 = vpop.f32.mrf.mxu1  ;;  %v1060_v35 = vadd.f32 %v1031_v46, %v910_v26 }
 0x136   : > { %v894_v40 = vpop.f32.mrf.mxu0 }
 0x137   : > { %v1044_v50 = vpop.f32.mrf.mxu1 }
 0x138   : > { %v2206_v51 = vpop.f32.mrf.mxu0 }
 0x139   : > { %v2230_v52 = vpop.f32.mrf.mxu1  ;;  %v916_v17 = vadd.f32 %v2206_v51, %v766_v19 }
 0x13a   : > { %v897_v33 = vpop.f32.mrf.mxu0 }
 0x13b   : > { %v1047_v28 = vpop.f32.mrf.mxu1 }
 0x14c   : > { %v2249_v53 = vpop.f32.mrf.mxu0 }
 0x14d   : > { %v2814_v54 = vpop.f32.mrf.mxu1 }
 0x14e   : > { %2841 = vst [vmem:[#allocation2_spill] sm:$0xff] %v2814_v54  ;;  %v1179_v55 = vpop.f32.mrf.mxu0  ;;  %v608_v54 = vadd.f32 %v577_v6, %v436_v36  ;;  %v911_v6 = vadd.f32 %v2201_v42, %v761_v11 }
 0x14f   : > { %v2816_v56 = vpop.f32.mrf.mxu1 }
 0x150   : > { %2842 = vst [vmem:[#allocation3_spill] sm:$0xff] %v2816_v56  ;;  %v2250_v57 = vpop.f32.mrf.mxu0  ;;  %v611_v56 = vadd.f32 %v2154_v12, %v447_v47  ;;  %v759_v15 = vadd.f32 %v728_v21, %v608_v54  ;;  %v1061_v38 = vadd.f32 %v2225_v23, %v911_v6  ;;  %v1066_v54 = vadd.f32 %v2230_v52, %v916_v17 }
 0x151   : > { %v2818_v58 = vpop.f32.mrf.mxu1 }
 0x152   : > { %2843 = vst [vmem:[#allocation4_spill] sm:$0xff] %v2818_v58  ;;  %v1182_v59 = vpop.f32.mrf.mxu0  ;;  %v762_v16 = vadd.f32 %v2178_v22, %v611_v56  ;;  %v909_v36 = vadd.f32 %v878_v30, %v759_v15  ;;  %v1212_v25 = vadd.f32 %v2249_v53, %v1061_v38 }
 0x153   : > { %v2820_v60 = vpop.f32.mrf.mxu1  ;;  %v1211_v56 = vadd.f32 %v1182_v59, %v1060_v35 }
 0x154   : > { %2844 = vst [vmem:[#allocation5_spill] sm:$0xff] %v2820_v60  ;;  %v2253_v62 = vpop.f32.mrf.mxu0  ;;  %v452_v60 = vadd.f32 %v451_v14, %v338_v13  ;;  %v912_v12 = vadd.f32 %v2202_v45, %v762_v16  ;;  %v764_v13 = vadd.f32 %v747_v41, %v613_v7  ;;  %v915_v14 = vadd.f32 %v2205_v48, %v765_v9 }
 0x155   : > { %v2277_v58 = vpop.f32.mrf.mxu1  ;;  %v1059_v20 = vadd.f32 %v1028_v43, %v909_v36 }
 0x156   : > { %v612_v5 = vadd.f32 %v593_v29, %v452_v60  ;;  %v1195_v10 = vpop.f32.mrf.mxu0  ;;  %v914_v34 = vadd.f32 %v897_v33, %v764_v13  ;;  %v1062_v21 = vadd.f32 %v2226_v31, %v912_v12  ;;  %v1065_v22 = vadd.f32 %v2229_v49, %v915_v14  ;;  %v2845_v31 = vld [vmem:[#allocation2_spill] sm:$0xff] }
 0x157   : > { %v1345_v8 = vpop.f32.mrf.mxu1  ;;  %v1210_v42 = vadd.f32 %v1179_v55, %v1059_v20  ;;  %v1362_v49 = vadd.f32 %v2845_v31, %v1212_v25  ;;  %v2846_v52 = vld [vmem:[#allocation3_spill] sm:$0xff] }
 0x158   : > { %v763_v47 = vadd.f32 %v744_v32, %v612_v5  ;;  %v2254_v18 = vpop.f32.mrf.mxu0  ;;  %v1213_v30 = vadd.f32 %v2250_v57, %v1062_v21  ;;  %v1064_v45 = vadd.f32 %v1047_v28, %v914_v34  ;;  %v1216_v48 = vadd.f32 %v2253_v62, %v1065_v22 }
 0x159   : > { %v2278_v24 = vpop.f32.mrf.mxu1  ;;  %v1217_v51 = vadd.f32 %v2254_v18, %v1066_v54  ;;  %v1360_v60 = vadd.f32 %v2846_v52, %v1210_v42  ;;  %v2847_v46 = vld [vmem:[#allocation4_spill] sm:$0xff] }
 0x15a   : > { %v913_v29 = vadd.f32 %v894_v40, %v763_v47  ;;  %v1198_v27 = vpop.f32.mrf.mxu0  ;;  %v1363_v53 = vadd.f32 %v2847_v46, %v1213_v30  ;;  %v1366_v57 = vadd.f32 %v2277_v58, %v1216_v48 }
 0x15b   : > { %v1348_v32 = vpop.f32.mrf.mxu1  ;;  %v1215_v23 = vadd.f32 %v1198_v27, %v1064_v45  ;;  %v1367_v44 = vadd.f32 %v2278_v24, %v1217_v51  ;;  %v2848_v28 = vld [vmem:[#allocation5_spill] sm:$0xff] }
 0x15c   : > { %v1063_v41 = vadd.f32 %v1044_v50, %v913_v29  ;;  %v1361_v61 = vadd.f32 %v2848_v28, %v1211_v56 }
 0x15d   : > { %v1365_v2 = vadd.f32 %v1348_v32, %v1215_v23 }
 0x15e   : > { %v1214_v33 = vadd.f32 %v1195_v10, %v1063_v41 }
 0x160   : > { %v1364_v1 = vadd.f32 %v1345_v8, %v1214_v33 }
 0x16c   : > { %v2297_v37 = vpop.f32.mrf.mxu0 }
 0x16d   : > { %v2301_v40 = vpop.f32.mrf.mxu1  ;;  %v1512_v62 = vadd.f32 %v2297_v37, %v1362_v49 }
 0x16e   : > { %v1479_v43 = vpop.f32.mrf.mxu0  ;;  %v1516_v3 = vadd.f32 %v2301_v40, %v1366_v57 }
 0x16f   : > { %v1495_v55 = vpop.f32.mrf.mxu1  ;;  %v1510_v63 = vadd.f32 %v1479_v43, %v1360_v60  ;;  %v1574_v36 = vmul.f32 %v1512_v62, %v1512_v62 }
 0x170   : > { %v2298_v50 = vpop.f32.mrf.mxu0  ;;  %v1514_v11 = vadd.f32 %v1495_v55, %v1364_v1  ;;  %v1578_v20 = vmul.f32 %v1516_v3, %v1516_v3 }
 0x171   : > { %v1513_v59 = vadd.f32 %v2298_v50, %v1363_v53  ;;  %v2302_v0 = vpop.f32.mrf.mxu1  ;;  %v1572_v9 = vmul.f32 %v1510_v63, %v1510_v63 }
 0x172   : > { %v1517_v4 = vadd.f32 %v2302_v0, %v1367_v44  ;;  %v1482_v5 = vpop.f32.mrf.mxu0  ;;  %v1576_v18 = vmul.f32 %v1514_v11, %v1514_v11 }
 0x173   : > { %v1964_v7 = vpack.c.bf16 %v1513_v59, %v1512_v62  ;;  %v1511_v10 = vadd.f32 %v1482_v5, %v1361_v61  ;;  %v1498_v58 = vpop.f32.mrf.mxu1  ;;  %v1575_v13 = vmul.f32 %v1513_v59, %v1513_v59 }
 0x174   : > { %v1974_v15 = vpack.c.bf16 %v1517_v4, %v1516_v3  ;;  %v1515_v16 = vadd.f32 %v1498_v58, %v1365_v2  ;;  %v1579_v54 = vmul.f32 %v1517_v4, %v1517_v4 }
 0x175   : > { %1976 = vst [vmem:[%s177_s19 + $0x8] sm:$0xff] %v1964_v7   ;;  %v1959_v19 = vpack.c.bf16 %v1511_v10, %v1510_v63  ;;  %v1558_v39 = vadd.f32 %v1511_v10, %v1510_v63  ;;  %v1573_v6 = vmul.f32 %v1511_v10, %v1511_v10 }
 0x176   : > { %1978 = vst [vmem:[%s177_s19 + $0x18] sm:$0xff] %v1974_v15   ;;  %v1969_v8 = vpack.c.bf16 %v1515_v16, %v1514_v11  ;;  %v1577_v34 = vmul.f32 %v1515_v16, %v1515_v16 }
 0x177   : > { %1960 = vst [vmem:[%s177_s19] sm:$0xff] %v1959_v19   ;;  %v1559_v12 = vadd.f32 %v1558_v39, %v1512_v62  ;;  %v1580_v47 = vadd.f32 %v1573_v6, %v1572_v9 }
 0x178   : > { %1977 = vst [vmem:[%s177_s19 + $0x10] sm:$0xff] %v1969_v8  }
 0x179   : > { %v1581_v14 = vadd.f32 %v1580_v47, %v1574_v36  ;;  %v1560_v17 = vadd.f32 %v1559_v12, %v1513_v59 }
 0x17b   : > { %v1561_v26 = vadd.f32 %v1560_v17, %v1514_v11  ;;  %v1582_v24 = vadd.f32 %v1581_v14, %v1575_v13 }
 0x17d   : > { %v1562_v29 = vadd.f32 %v1561_v26, %v1515_v16  ;;  %v1583_v38 = vadd.f32 %v1582_v24, %v1576_v18 }
 0x17f   : > { %v1563_v21 = vadd.f32 %v1562_v29, %v1516_v3  ;;  %v1584_v22 = vadd.f32 %v1583_v38, %v1577_v34 }
 0x181   : > { %v1564_v27 = vadd.f32 %v1563_v21, %v1517_v4  ;;  %v1585_v35 = vadd.f32 %v1584_v22, %v1578_v20 }
 0x183   : > { %v1565_v25 = vrot.slane %v1564_v27, 4  ;;  %v1586_v42 = vadd.f32 %v1585_v35, %v1579_v54 }
 0x185   : > { %v1566_v30 = vadd.f32 %v1565_v25, %v1564_v27  ;;  %v1587_v32 = vrot.slane %v1586_v42, 4 }
 0x187   : > { %v1567_v41 = vrot.slane %v1566_v30, 2  ;;  %v1588_v45 = vadd.f32 %v1587_v32, %v1586_v42 }
 0x189   : > { %v1568_v48 = vadd.f32 %v1567_v41, %v1566_v30  ;;  %v1589_v51 = vrot.slane %v1588_v45, 2 }
 0x18b   : > { %v1569_v37 = vrot.slane %v1568_v48, 1  ;;  %v1590_v56 = vadd.f32 %v1589_v51, %v1588_v45 }
 0x18d   : > { %v1570_v40 = vadd.f32 %v1569_v37, %v1568_v48  ;;  %v1591_v33 = vrot.slane %v1590_v56, 1 }
 0x18f   : > { %1571 = vst [vmem:[%s181_s23] sm:$0x1] %v1570_v40  ;;  %v1592_v23 = vadd.f32 %v1591_v33, %v1590_v56 }
 0x191   : > { %1593 = vst [vmem:[%s181_s23 + $0x1] sm:$0x1] %v1592_v23 }
 0x192 PF: > { %s14_s12 = sadd.s32 1, %s2406_s12  }
 0x193   : > { %p11_p4 = scmp.ge.s32.totalorder %s14_s12, 4  }
 0x195   :  { %13 = sbr.rel (!%p11_p4) target bundleno = 1 (0x1), region = 80 }

// kernel: basic_block_forward.4
= control target key start
LH: loop header
LB: loop body
LE: loop exit
PB: predicated region body
PF: predicated region fallthrough
CT: control target
= control target key end

     0   :  { %s2566_s12 = smov 0   ;;  %s2893_s0 = inlined_call_operand.vmem [shape: f32[2,18,18,128], index: 0, kind: input, shape index: {}]   ;;  %s2894_s1 = inlined_call_operand.vmem [shape: bf16[3,3,128,128], index: 1, kind: input, shape index: {}]   ;;  %s2895_s2 = inlined_call_operand.vmem [shape: bf16[2,64,128], index: 2, kind: output, shape index: {0}]   ;;  %s2896_s3 = inlined_call_operand.vmem [shape: f32[2,2,128], index: 3, kind: output, shape index: {1}]  }
   0x1 LB: > { %s1795_s13 = sadd.s32 4294967295, %s2544_s12   ;;  %p1799_p0 = scmp.ge.s32.totalorder %s2544_s12, 1  ;;  %s2544_s12 = sphi %s2566_s12, %s14_s12  }
   0x2   : > { %p140_p1 = scmp.lt.s32.totalorder %s2544_s12, 3 }
   0x4   : > { %p141_p2 = pnand %p1799_p0, %p140_p1 }
   0x6   : > { %144 = sbr.rel (%p141_p2) target bundleno = 402 (0x192), region = 28 }
   0xb   : > { %v2466_v0 = vld [vmem:[%s2894_s1 + $0x78] sm:$0xff]   ;;  %p168_p3 = scmp.lt.s32.totalorder %s1795_s13, 1  ;;  %v2468_v2 = vld [vmem:[%s2894_s1 + $0x70] sm:$0xff]   ;;  %v2470_v4 = vld [vmem:[%s2894_s1 + $0x68] sm:$0xff]  }
   0xc   : > { %v2467_v1 = vld [vmem:[%s2894_s1 + $0x38] sm:$0xff]   ;;  %2225 = vmatprep.subr.bf16.mxu0 %v2466_v0  ;;  %v2469_v3 = vld [vmem:[%s2894_s1 + $0x30] sm:$0xff]   ;;  %v2471_v5 = vld [vmem:[%s2894_s1 + $0x28] sm:$0xff]  }
   0xd   : > { %2249 = vmatprep.subr.bf16.mxu1 %v2467_v1  ;;  %2226 = vmatpush3.bf16.msra.mxu0 %v2466_v0  ;;  %s2906_s13 = smov (!%p168_p3, %s1795_s13), 1  ;;  %v2472_v6 = vld [vmem:[%s2894_s1 + $0x60] sm:$0xff]   ;;  %v2474_v8 = vld [vmem:[%s2894_s1 + $0x58] sm:$0xff]   ;;  %v2476_v10 = vld [vmem:[%s2894_s1 + $0x50] sm:$0xff]  }
   0xe   : > { %2250 = vmatpush3.bf16.msra.mxu1 %v2467_v1  ;;  %2227 = vmatprep.subr.bf16.mxu0 %v2468_v2  ;;  %v2473_v7 = vld [vmem:[%s2894_s1 + $0x20] sm:$0xff]   ;;  %s2457_s30 = smul.u32 432, %s2906_s13  ;;  %v2475_v9 = vld [vmem:[%s2894_s1 + $0x18] sm:$0xff]   ;;  %v2477_v14 = vld [vmem:[%s2894_s1 + $0x10] sm:$0xff]   ;;  %s1803_s20 = sshll.u32 %s2906_s13, 1 }
   0xf   : > { %2251 = vmatprep.subr.bf16.mxu1 %v2469_v3  ;;  %v2478_v18 = vld [vmem:[%s2894_s1 + $0x48] sm:$0xff]   ;;  %v2480_v20 = vld [vmem:[%s2894_s1 + $0x40] sm:$0xff]   ;;  %v2482_v26 = vld [vmem:[%s2894_s1 + $0xb8] sm:$0xff]   ;;  %s181_s23 = scalar_lea.vmem %s2896_s3, %s1803_s20 }
  0x10   : > { %s2610_s10 = scalar_lea.vmem %s2893_s0, %s2457_s30  ;;  %v2479_v19 = vld [vmem:[%s2894_s1 + $0x8] sm:$0xff]   ;;  %v2481_v21 = vld [vmem:[%s2894_s1] sm:$0xff]   ;;  %v2483_v27 = vld [vmem:[%s2894_s1 + $0xf8] sm:$0xff]  }
  0x11   : > { %2228 = vmatpush3.bf16.msra.mxu0 %v2468_v2  ;;  %v1811_v11 = vld [vmem:[%s2610_s10 + $0x1] ss:$2 sm:$0xff]  ;;  %v1812_v12 = vld [vmem:[%s2610_s10 + $0x31] ss:$2 sm:$0xff]  ;;  %v183_v13 = vld [vmem:[%s2610_s10] ss:$2 sm:$0xff] }
  0x12   : > { %2252 = vmatpush3.bf16.msra.mxu1 %v2469_v3  ;;  %2229 = vmatprep.subr.bf16.mxu0 %v2470_v4  ;;  %v234_v15 = vpack.c.bf16 %v1812_v12, %v1811_v11  ;;  %v1804_v16 = vld [vmem:[%s2610_s10 + $0x30] ss:$2 sm:$0xff]  ;;  %v1813_v22 = vld [vmem:[%s2610_s10 + $0x61] ss:$2 sm:$0xff]  ;;  %v1814_v23 = vld [vmem:[%s2610_s10 + $0x91] ss:$2 sm:$0xff] }
  0x13   : > { %2253 = vmatprep.subr.bf16.mxu1 %v2471_v5  ;;  %v198_v17 = vpack.c.bf16 %v1804_v16, %v183_v13  ;;  %v1805_v24 = vld [vmem:[%s2610_s10 + $0x60] ss:$2 sm:$0xff]  ;;  %v1806_v25 = vld [vmem:[%s2610_s10 + $0x90] ss:$2 sm:$0xff]  ;;  %v235_v28 = vpack.c.bf16 %v1814_v23, %v1813_v22  ;;  %v1815_v30 = vld [vmem:[%s2610_s10 + $0xc1] ss:$2 sm:$0xff] }
  0x14   : > { %2241 = vmatprep.mubr.bf16.mxu0 %v234_v15  ;;  %v2484_v29 = vld [vmem:[%s2894_s1 + $0xb0] sm:$0xff]   ;;  %v1807_v32 = vld [vmem:[%s2610_s10 + $0xc0] ss:$2 sm:$0xff]  ;;  %v199_v33 = vpack.c.bf16 %v1806_v25, %v1805_v24  ;;  %v1817_v37 = vld [vmem:[%s2610_s10 + $0x121] ss:$2 sm:$0xff] }
  0x15   : > { %2230 = vmatpush3.bf16.msra.mxu0 %v2470_v4  ;;  %2265 = vmatprep.mubr.bf16.mxu1 %v198_v17  ;;  %v1816_v31 = vld [vmem:[%s2610_s10 + $0xf1] ss:$2 sm:$0xff]  ;;  %v1808_v34 = vld [vmem:[%s2610_s10 + $0xf0] ss:$2 sm:$0xff]  ;;  %v2486_v38 = vld [vmem:[%s2894_s1 + $0xa8] sm:$0xff]  }
  0x16   : > { %2254 = vmatpush3.bf16.msra.mxu1 %v2471_v5  ;;  %2231 = vmatprep.subr.bf16.mxu0 %v2472_v6  ;;  %v2485_v35 = vld [vmem:[%s2894_s1 + $0xf0] sm:$0xff]   ;;  %v236_v36 = vpack.c.bf16 %v1816_v31, %v1815_v30  ;;  %v200_v39 = vpack.c.bf16 %v1808_v34, %v1807_v32  ;;  %v1809_v41 = vld [vmem:[%s2610_s10 + $0x120] ss:$2 sm:$0xff]  ;;  %v2490_v54 = vld [vmem:[%s2894_s1 + $0x98] sm:$0xff]  }
  0x17   : > { %2255 = vmatprep.subr.bf16.mxu1 %v2473_v7  ;;  %v1818_v40 = vld [vmem:[%s2610_s10 + $0x151] ss:$2 sm:$0xff]  ;;  %v1810_v42 = vld [vmem:[%s2610_s10 + $0x150] ss:$2 sm:$0xff]  ;;  %v2487_v43 = vld [vmem:[%s2894_s1 + $0xe8] sm:$0xff]  }
  0x18   : > { %v237_v44 = vpack.c.bf16 %v1818_v40, %v1817_v37  ;;  %v1851_v45 = vld [vmem:[%s2610_s10 + $0x2] ss:$2 sm:$0xff]  ;;  %v1852_v46 = vld [vmem:[%s2610_s10 + $0x32] ss:$2 sm:$0xff]  ;;  %v201_v48 = vpack.c.bf16 %v1810_v42, %v1809_v41 }
  0x19   : > { %2232 = vmatpush3.bf16.msra.mxu0 %v2472_v6  ;;  %v1883_v47 = vld [vmem:[%s2610_s10 + $0x18] ss:$2 sm:$0xff]  ;;  %v1884_v49 = vld [vmem:[%s2610_s10 + $0x48] ss:$2 sm:$0xff]  ;;  %v497_v52 = vpack.c.bf16 %v1852_v46, %v1851_v45  ;;  %v1919_v45 = vld [vmem:[%s2610_s10 + $0xd9] ss:$2 sm:$0xff] }
  0x1a   : > { %2256 = vmatpush3.bf16.msra.mxu1 %v2473_v7  ;;  %2233 = vmatprep.subr.bf16.mxu0 %v2474_v8  ;;  %v2488_v50 = vld [vmem:[%s2894_s1 + $0xa0] sm:$0xff]   ;;  %v655_v53 = vpack.c.bf16 %v1884_v49, %v1883_v47  ;;  %v2491_v55 = vld [vmem:[%s2894_s1 + $0xd8] sm:$0xff]   ;;  %v2492_v56 = vld [vmem:[%s2894_s1 + $0x90] sm:$0xff]  }
  0x1b   : > { %2257 = vmatprep.subr.bf16.mxu1 %v2475_v9  ;;  %v2489_v51 = vld [vmem:[%s2894_s1 + $0xe0] sm:$0xff]   ;;  %v2493_v57 = vld [vmem:[%s2894_s1 + $0xd0] sm:$0xff]   ;;  %v2494_v58 = vld [vmem:[%s2894_s1 + $0x88] sm:$0xff]  }
  0x1c   : > { %v2495_v59 = vld [vmem:[%s2894_s1 + $0xc8] sm:$0xff]   ;;  %v2496_v60 = vld [vmem:[%s2894_s1 + $0x80] sm:$0xff]   ;;  %v2498_v0 = vld [vmem:[%s2894_s1 + $0x138] sm:$0xff]  }
  0x1d   : > { %2234 = vmatpush3.bf16.msra.mxu0 %v2474_v8  ;;  %v2497_v61 = vld [vmem:[%s2894_s1 + $0xc0] sm:$0xff]   ;;  %v2499_v1 = vld [vmem:[%s2894_s1 + $0x178] sm:$0xff]   ;;  %v1886_v3 = vld [vmem:[%s2610_s10 + $0xa8] ss:$2 sm:$0xff] }
  0x1e   : > { %2258 = vmatpush3.bf16.msra.mxu1 %v2475_v9  ;;  %2235 = vmatprep.subr.bf16.mxu0 %v2476_v10  ;;  %v1853_v62 = vld [vmem:[%s2610_s10 + $0x62] ss:$2 sm:$0xff]  ;;  %v1854_v63 = vld [vmem:[%s2610_s10 + $0x92] ss:$2 sm:$0xff]  ;;  %v1920_v46 = vld [vmem:[%s2610_s10 + $0x109] ss:$2 sm:$0xff] }
  0x1f   : > { %2259 = vmatprep.subr.bf16.mxu1 %v2477_v14  ;;  %v1885_v2 = vld [vmem:[%s2610_s10 + $0x78] ss:$2 sm:$0xff]  ;;  %v498_v5 = vpack.c.bf16 %v1854_v63, %v1853_v62  ;;  %v1888_v9 = vld [vmem:[%s2610_s10 + $0x108] ss:$2 sm:$0xff] }
  0x20   : > { %v1855_v4 = vld [vmem:[%s2610_s10 + $0xc2] ss:$2 sm:$0xff]  ;;  %v1856_v6 = vld [vmem:[%s2610_s10 + $0xf2] ss:$2 sm:$0xff]  ;;  %v656_v8 = vpack.c.bf16 %v1886_v3, %v1885_v2 }
  0x21   : > { %2236 = vmatpush3.bf16.msra.mxu0 %v2476_v10  ;;  %v1887_v7 = vld [vmem:[%s2610_s10 + $0xd8] ss:$2 sm:$0xff]  ;;  %v2500_v10 = vld [vmem:[%s2894_s1 + $0x130] sm:$0xff]   ;;  %v499_v12 = vpack.c.bf16 %v1856_v6, %v1855_v4  ;;  %v2502_v16 = vld [vmem:[%s2894_s1 + $0x128] sm:$0xff]  }
  0x22   : > { %2260 = vmatpush3.bf16.msra.mxu1 %v2477_v14  ;;  %2237 = vmatprep.subr.bf16.mxu0 %v2478_v18  ;;  %v2501_v11 = vld [vmem:[%s2894_s1 + $0x170] sm:$0xff]   ;;  %v657_v15 = vpack.c.bf16 %v1888_v9, %v1887_v7  ;;  %v1889_v17 = vld [vmem:[%s2610_s10 + $0x138] ss:$2 sm:$0xff]  ;;  %v2510_v34 = vld [vmem:[%s2894_s1 + $0x108] sm:$0xff]  }
  0x23   : > { %2261 = vmatprep.subr.bf16.mxu1 %v2479_v19  ;;  %v1857_v13 = vld [vmem:[%s2610_s10 + $0x122] ss:$2 sm:$0xff]  ;;  %v1858_v14 = vld [vmem:[%s2610_s10 + $0x152] ss:$2 sm:$0xff] }
  0x24   : > { %v500_v22 = vpack.c.bf16 %v1858_v14, %v1857_v13  ;;  %v1947_v23 = vld [vmem:[%s2610_s10 + $0x1a] ss:$2 sm:$0xff]  ;;  %v1948_v25 = vld [vmem:[%s2610_s10 + $0x4a] ss:$2 sm:$0xff] }
  0x25   : > { %2238 = vmatpush3.bf16.msra.mxu0 %v2478_v18  ;;  %v1890_v18 = vld [vmem:[%s2610_s10 + $0x168] ss:$2 sm:$0xff]  ;;  %v2506_v30 = vld [vmem:[%s2894_s1 + $0x118] sm:$0xff]   ;;  %v2513_v37 = vld [vmem:[%s2894_s1 + $0x140] sm:$0xff]  }
  0x26   : > { %2262 = vmatpush3.bf16.msra.mxu1 %v2479_v19  ;;  %2239 = vmatprep.subr.bf16.mxu0 %v2480_v20  ;;  %v2503_v19 = vld [vmem:[%s2894_s1 + $0x168] sm:$0xff]   ;;  %v658_v24 = vpack.c.bf16 %v1890_v18, %v1889_v17  ;;  %v2507_v31 = vld [vmem:[%s2894_s1 + $0x158] sm:$0xff]   ;;  %v2508_v32 = vld [vmem:[%s2894_s1 + $0x110] sm:$0xff]  }
  0x27   : > { %2263 = vmatprep.subr.bf16.mxu1 %v2481_v21  ;;  %v2514_v40 = vld [vmem:[%s2894_s1 + $0x1b8] sm:$0xff]   ;;  %v1980_v62 = vld [vmem:[%s2610_s10 + $0x60] ss:$2 sm:$0xff]  ;;  %v2525_v9 = vld [vmem:[%s2894_s1 + $0x1d0] sm:$0xff]  }
  0x28   : > { %v1949_v41 = vld [vmem:[%s2610_s10 + $0x7a] ss:$2 sm:$0xff]  ;;  %v1950_v42 = vld [vmem:[%s2610_s10 + $0xaa] ss:$2 sm:$0xff]  ;;  %v2013_v17 = vld [vmem:[%s2610_s10 + $0x91] ss:$2 sm:$0xff] }
  0x29   : > { %2240 = vmatpush3.bf16.msra.mxu0 %v2480_v20  ;;  %v1915_v20 = vld [vmem:[%s2610_s10 + $0x19] ss:$2 sm:$0xff]  ;;  %v972_v47 = vpack.c.bf16 %v1950_v42, %v1949_v41  ;;  %v1952_v49 = vld [vmem:[%s2610_s10 + $0x10a] ss:$2 sm:$0xff] }
  0x2a   : > { %2264 = vmatpush3.bf16.msra.mxu1 %v2481_v21  ;;  %2273 = vmatprep.subr.bf16.mxu0 %v2482_v26  ;;  %v1916_v21 = vld [vmem:[%s2610_s10 + $0x49] ss:$2 sm:$0xff]  ;;  %v2520_v2 = vld [vmem:[%s2894_s1 + $0x1a0] sm:$0xff]   ;;  %v2522_v6 = vld [vmem:[%s2894_s1 + $0x198] sm:$0xff]  }
  0x2b   : > { %2297 = vmatprep.subr.bf16.mxu1 %v2483_v27  ;;  %v2521_v3 = vld [vmem:[%s2894_s1 + $0x1e0] sm:$0xff]   ;;  %v2523_v7 = vld [vmem:[%s2894_s1 + $0x1d8] sm:$0xff]  }
  0x2c   : > { %2242 = vmatmul.mubr.bf16.vlgmr.msra.gmra.mxu0 %v235_v28  ;;  %v813_v28 = vpack.c.bf16 %v1916_v21, %v1915_v20  ;;  %v2529_v13 = vld [vmem:[%s2894_s1 + $0x1c0] sm:$0xff]   ;;  %v1981_v14 = vld [vmem:[%s2610_s10 + $0x90] ss:$2 sm:$0xff] }
  0x2d   : > { %2266 = vmatmul.mubr.bf16.vlgmr.msra.gmra.mxu1 %v199_v33  ;;  %2274 = vmatpush3.bf16.msra.mxu0 %v2482_v26  ;;  %v2504_v26 = vld [vmem:[%s2894_s1 + $0x120] sm:$0xff]   ;;  %v2509_v33 = vld [vmem:[%s2894_s1 + $0x150] sm:$0xff]   ;;  %v2534_v42 = vld [vmem:[%s2894_s1 + $0x218] sm:$0xff]  }
  0x2e   : > { %2298 = vmatpush3.bf16.msra.mxu1 %v2483_v27  ;;  %2275 = vmatprep.subr.bf16.mxu0 %v2484_v29  ;;  %v2505_v27 = vld [vmem:[%s2894_s1 + $0x160] sm:$0xff]   ;;  %v1983_v20 = vld [vmem:[%s2610_s10 + $0xf0] ss:$2 sm:$0xff] }
  0x2f   : > { %2299 = vmatprep.subr.bf16.mxu1 %v2485_v35  ;;  %2245 = vmatprep.mubr.bf16.mxu0 %v236_v36  ;;  %v2512_v36 = vld [vmem:[%s2894_s1 + $0x100] sm:$0xff]  }
  0x30   : > { %2269 = vmatprep.mubr.bf16.mxu1 %v200_v39  ;;  %v1918_v39 = vld [vmem:[%s2610_s10 + $0xa9] ss:$2 sm:$0xff]  ;;  %v1984_v21 = vld [vmem:[%s2610_s10 + $0x120] ss:$2 sm:$0xff] }
  0x31   : > { %2276 = vmatpush3.bf16.msra.mxu0 %v2484_v29  ;;  %v971_v29 = vpack.c.bf16 %v1948_v25, %v1947_v23  ;;  %v2014_v18 = vld [vmem:[%s2610_s10 + $0xc1] ss:$2 sm:$0xff]  ;;  %v2015_v23 = vld [vmem:[%s2610_s10 + $0xf1] ss:$2 sm:$0xff] }
  0x32   : > { %2300 = vmatpush3.bf16.msra.mxu1 %v2485_v35  ;;  %2277 = vmatprep.subr.bf16.mxu0 %v2486_v38  ;;  %v2511_v35 = vld [vmem:[%s2894_s1 + $0x148] sm:$0xff]   ;;  %v2531_v25 = vld [vmem:[%s2894_s1 + $0x230] sm:$0xff]  }
  0x33   : > { %2301 = vmatprep.subr.bf16.mxu1 %v2487_v43 }
  0x34   : > { %2246 = vmatmul.mubr.bf16.gmra.mxu0 %v237_v44 }
  0x35   : > { %2278 = vmatpush3.bf16.msra.mxu0 %v2486_v38  ;;  %2270 = vmatmul.mubr.bf16.gmra.mxu1 %v201_v48  ;;  %v1917_v38 = vld [vmem:[%s2610_s10 + $0x79] ss:$2 sm:$0xff]  ;;  %v1951_v48 = vld [vmem:[%s2610_s10 + $0xda] ss:$2 sm:$0xff] }
  0x36   : > { %2302 = vmatpush3.bf16.msra.mxu1 %v2487_v43  ;;  %2279 = vmatprep.subr.bf16.mxu0 %v2488_v50  ;;  %v2515_v43 = vld [vmem:[%s2894_s1 + $0x1f8] sm:$0xff]   ;;  %v814_v44 = vpack.c.bf16 %v1918_v39, %v1917_v38  ;;  %v2048_v38 = vld [vmem:[%s2610_s10 + $0x122] ss:$2 sm:$0xff] }
  0x37   : > { %2303 = vmatprep.subr.bf16.mxu1 %v2489_v51  ;;  %2289 = vmatprep.mubr.bf16.mxu0 %v497_v52  ;;  %v815_v52 = vpack.c.bf16 %v1920_v46, %v1919_v45  ;;  %v2533_v39 = vld [vmem:[%s2894_s1 + $0x220] sm:$0xff]  }
  0x38   : > { %2313 = vmatprep.mubr.bf16.mxu1 %v655_v53  ;;  %v973_v53 = vpack.c.bf16 %v1952_v49, %v1951_v48  ;;  %v2537_v45 = vld [vmem:[%s2894_s1 + $0x200] sm:$0xff]  }
  0x39   : > { %2280 = vmatpush3.bf16.msra.mxu0 %v2488_v50  ;;  %v2516_v50 = vld [vmem:[%s2894_s1 + $0x1b0] sm:$0xff]  }
  0x3a   : > { %2304 = vmatpush3.bf16.msra.mxu1 %v2489_v51  ;;  %2281 = vmatprep.subr.bf16.mxu0 %v2490_v54  ;;  %v2517_v51 = vld [vmem:[%s2894_s1 + $0x1f0] sm:$0xff]  }
  0x3b   : > { %2305 = vmatprep.subr.bf16.mxu1 %v2491_v55  ;;  %v2045_v46 = vld [vmem:[%s2610_s10 + $0x92] ss:$2 sm:$0xff]  ;;  %v2050_v49 = vld [vmem:[%s2610_s10 + $0x182] ss:$2 sm:$0xff] }
  0x3c   : > { %v2049_v48 = vld [vmem:[%s2610_s10 + $0x152] ss:$2 sm:$0xff] }
  0x3d   : > { %2282 = vmatpush3.bf16.msra.mxu0 %v2490_v54  ;;  %v1921_v54 = vld [vmem:[%s2610_s10 + $0x139] ss:$2 sm:$0xff] }
  0x3e   : > { %2306 = vmatpush3.bf16.msra.mxu1 %v2491_v55  ;;  %2283 = vmatprep.subr.bf16.mxu0 %v2492_v56  ;;  %v1922_v55 = vld [vmem:[%s2610_s10 + $0x169] ss:$2 sm:$0xff] }
  0x3f   : > { %2307 = vmatprep.subr.bf16.mxu1 %v2493_v57 }
  0x41   : > { %2284 = vmatpush3.bf16.msra.mxu0 %v2492_v56  ;;  %v2518_v56 = vld [vmem:[%s2894_s1 + $0x1a8] sm:$0xff]  }
  0x42   : > { %2308 = vmatpush3.bf16.msra.mxu1 %v2493_v57  ;;  %2285 = vmatprep.subr.bf16.mxu0 %v2494_v58  ;;  %v1953_v57 = vld [vmem:[%s2610_s10 + $0x13a] ss:$2 sm:$0xff] }
  0x43   : > { %2309 = vmatprep.subr.bf16.mxu1 %v2495_v59 }
  0x45   : > { %2286 = vmatpush3.bf16.msra.mxu0 %v2494_v58  ;;  %v1954_v58 = vld [vmem:[%s2610_s10 + $0x16a] ss:$2 sm:$0xff] }
  0x46   : > { %2310 = vmatpush3.bf16.msra.mxu1 %v2495_v59  ;;  %2287 = vmatprep.subr.bf16.mxu0 %v2496_v60  ;;  %v2519_v59 = vld [vmem:[%s2894_s1 + $0x1e8] sm:$0xff]   ;;  %v974_v63 = vpack.c.bf16 %v1954_v58, %v1953_v57 }
  0x47   : > { %2311 = vmatprep.subr.bf16.mxu1 %v2497_v61 }
  0x49   : > { %2288 = vmatpush3.bf16.msra.mxu0 %v2496_v60  ;;  %v816_v60 = vpack.c.bf16 %v1922_v55, %v1921_v54 }
  0x4a   : > { %2312 = vmatpush3.bf16.msra.mxu1 %v2497_v61  ;;  %2321 = vmatprep.subr.bf16.mxu0 %v2498_v0  ;;  %v1979_v61 = vld [vmem:[%s2610_s10 + $0x30] ss:$2 sm:$0xff] }
  0x4b   : > { %2345 = vmatprep.subr.bf16.mxu1 %v2499_v1  ;;  %v1129_v4 = vpack.c.bf16 %v1980_v62, %v1979_v61 }
  0x4c   : > { %2290 = vmatmul.mubr.bf16.vlgmr.msra.gmra.mxu0 %v498_v5 }
  0x4d   : > { %2314 = vmatmul.mubr.bf16.vlgmr.msra.gmra.mxu1 %v656_v8  ;;  %2322 = vmatpush3.bf16.msra.mxu0 %v2498_v0  ;;  %v2011_v0 = vld [vmem:[%s2610_s10 + $0x31] ss:$2 sm:$0xff] }
  0x4e   : > { %2346 = vmatpush3.bf16.msra.mxu1 %v2499_v1  ;;  %2323 = vmatprep.subr.bf16.mxu0 %v2500_v10  ;;  %v2012_v1 = vld [vmem:[%s2610_s10 + $0x61] ss:$2 sm:$0xff]  ;;  %v2524_v8 = vld [vmem:[%s2894_s1 + $0x190] sm:$0xff]  }
  0x4f   : > { %2347 = vmatprep.subr.bf16.mxu1 %v2501_v11  ;;  %2293 = vmatprep.mubr.bf16.mxu0 %v499_v12  ;;  %v1287_v5 = vpack.c.bf16 %v2012_v1, %v2011_v0  ;;  %v2528_v12 = vld [vmem:[%s2894_s1 + $0x180] sm:$0xff]  }
  0x50   : > { %2317 = vmatprep.mubr.bf16.mxu1 %v657_v15  ;;  %v1982_v15 = vld [vmem:[%s2610_s10 + $0xc0] ss:$2 sm:$0xff] }
  0x51   : > { %2324 = vmatpush3.bf16.msra.mxu0 %v2500_v10  ;;  %v2526_v10 = vld [vmem:[%s2894_s1 + $0x188] sm:$0xff]  }
  0x52   : > { %2348 = vmatpush3.bf16.msra.mxu1 %v2501_v11  ;;  %2325 = vmatprep.subr.bf16.mxu0 %v2502_v16  ;;  %v2527_v11 = vld [vmem:[%s2894_s1 + $0x1c8] sm:$0xff]  }
  0x53   : > { %2349 = vmatprep.subr.bf16.mxu1 %v2503_v19 }
  0x54   : > { %2294 = vmatmul.mubr.bf16.gmra.mxu0 %v500_v22  ;;  %v1288_v22 = vpack.c.bf16 %v2014_v18, %v2013_v17 }
  0x55   : > { %2326 = vmatpush3.bf16.msra.mxu0 %v2502_v16  ;;  %2318 = vmatmul.mubr.bf16.gmra.mxu1 %v658_v24  ;;  %v2530_v16 = vld [vmem:[%s2894_s1 + $0x238] sm:$0xff]   ;;  %v2016_v24 = vld [vmem:[%s2610_s10 + $0x121] ss:$2 sm:$0xff] }
  0x56   : > { %2350 = vmatpush3.bf16.msra.mxu1 %v2503_v19  ;;  %2327 = vmatprep.subr.bf16.mxu0 %v2504_v26  ;;  %v1130_v19 = vpack.c.bf16 %v1982_v15, %v1981_v14 }
  0x57   : > { %2351 = vmatprep.subr.bf16.mxu1 %v2505_v27  ;;  %2337 = vmatprep.mubr.bf16.mxu0 %v813_v28  ;;  %v1985_v28 = vld [vmem:[%s2610_s10 + $0x150] ss:$2 sm:$0xff] }
  0x58   : > { %2361 = vmatprep.mubr.bf16.mxu1 %v971_v29  ;;  %v1986_v29 = vld [vmem:[%s2610_s10 + $0x180] ss:$2 sm:$0xff] }
  0x59   : > { %2328 = vmatpush3.bf16.msra.mxu0 %v2504_v26  ;;  %v1131_v26 = vpack.c.bf16 %v1984_v21, %v1983_v20 }
  0x5a   : > { %2352 = vmatpush3.bf16.msra.mxu1 %v2505_v27  ;;  %2329 = vmatprep.subr.bf16.mxu0 %v2506_v30  ;;  %v1289_v27 = vpack.c.bf16 %v2016_v24, %v2015_v23 }
  0x5b   : > { %2353 = vmatprep.subr.bf16.mxu1 %v2507_v31 }
  0x5d   : > { %2330 = vmatpush3.bf16.msra.mxu0 %v2506_v30  ;;  %v2532_v30 = vld [vmem:[%s2894_s1 + $0x228] sm:$0xff]  }
  0x5e   : > { %2354 = vmatpush3.bf16.msra.mxu1 %v2507_v31  ;;  %2331 = vmatprep.subr.bf16.mxu0 %v2508_v32  ;;  %v2017_v31 = vld [vmem:[%s2610_s10 + $0x151] ss:$2 sm:$0xff] }
  0x5f   : > { %2355 = vmatprep.subr.bf16.mxu1 %v2509_v33 }
  0x61   : > { %2332 = vmatpush3.bf16.msra.mxu0 %v2508_v32  ;;  %v2018_v32 = vld [vmem:[%s2610_s10 + $0x181] ss:$2 sm:$0xff] }
  0x62   : > { %2356 = vmatpush3.bf16.msra.mxu1 %v2509_v33  ;;  %2333 = vmatprep.subr.bf16.mxu0 %v2510_v34  ;;  %v1132_v33 = vpack.c.bf16 %v1986_v29, %v1985_v28 }
  0x63   : > { %2357 = vmatprep.subr.bf16.mxu1 %v2511_v35 }
  0x65   : > { %2334 = vmatpush3.bf16.msra.mxu0 %v2510_v34  ;;  %v2043_v34 = vld [vmem:[%s2610_s10 + $0x32] ss:$2 sm:$0xff] }
  0x66   : > { %2358 = vmatpush3.bf16.msra.mxu1 %v2511_v35  ;;  %2335 = vmatprep.subr.bf16.mxu0 %v2512_v36  ;;  %v2044_v35 = vld [vmem:[%s2610_s10 + $0x62] ss:$2 sm:$0xff] }
  0x67   : > { %2359 = vmatprep.subr.bf16.mxu1 %v2513_v37 }
  0x69   : > { %2336 = vmatpush3.bf16.msra.mxu0 %v2512_v36  ;;  %v1290_v36 = vpack.c.bf16 %v2018_v32, %v2017_v31 }
  0x6a   : > { %2360 = vmatpush3.bf16.msra.mxu1 %v2513_v37  ;;  %2369 = vmatprep.subr.bf16.mxu0 %v2514_v40  ;;  %v2047_v37 = vld [vmem:[%s2610_s10 + $0xf2] ss:$2 sm:$0xff] }
  0x6b   : > { %2393 = vmatprep.subr.bf16.mxu1 %v2515_v43  ;;  %v1447_v41 = vpack.c.bf16 %v2048_v38, %v2047_v37 }
  0x6c   : > { %2338 = vmatmul.mubr.bf16.vlgmr.msra.gmra.mxu0 %v814_v44  ;;  %v2536_v44 = vld [vmem:[%s2894_s1 + $0x208] sm:$0xff]  }
  0x6d   : > { %2362 = vmatmul.mubr.bf16.vlgmr.msra.gmra.mxu1 %v972_v47  ;;  %2370 = vmatpush3.bf16.msra.mxu0 %v2514_v40  ;;  %v1445_v40 = vpack.c.bf16 %v2044_v35, %v2043_v34  ;;  %v2046_v47 = vld [vmem:[%s2610_s10 + $0xc2] ss:$2 sm:$0xff]  ;;  %s2085_s10 = sshll.u32 %s2906_s13, 5 }
  0x6e   : > { %2394 = vmatpush3.bf16.msra.mxu1 %v2515_v43  ;;  %2371 = vmatprep.subr.bf16.mxu0 %v2516_v50  ;;  %v2535_v43 = vld [vmem:[%s2894_s1 + $0x210] sm:$0xff]   ;;  %s177_s19 = scalar_lea.vmem %s2895_s2, %s2085_s10 }
  0x6f   : > { %2395 = vmatprep.subr.bf16.mxu1 %v2517_v51  ;;  %2341 = vmatprep.mubr.bf16.mxu0 %v815_v52 }
  0x70   : > { %2365 = vmatprep.mubr.bf16.mxu1 %v973_v53 }
  0x71   : > { %2372 = vmatpush3.bf16.msra.mxu0 %v2516_v50  ;;  %v1446_v50 = vpack.c.bf16 %v2046_v47, %v2045_v46 }
  0x72   : > { %2396 = vmatpush3.bf16.msra.mxu1 %v2517_v51  ;;  %2373 = vmatprep.subr.bf16.mxu0 %v2518_v56  ;;  %v1448_v51 = vpack.c.bf16 %v2050_v49, %v2049_v48 }
  0x73   : > { %2397 = vmatprep.subr.bf16.mxu1 %v2519_v59 }
  0x74   : > { %2342 = vmatmul.mubr.bf16.gmra.mxu0 %v816_v60 }
  0x75   : > { %2374 = vmatpush3.bf16.msra.mxu0 %v2518_v56  ;;  %2366 = vmatmul.mubr.bf16.gmra.mxu1 %v974_v63 }
  0x76   : > { %2398 = vmatpush3.bf16.msra.mxu1 %v2519_v59  ;;  %2375 = vmatprep.subr.bf16.mxu0 %v2520_v2 }
  0x77   : > { %2399 = vmatprep.subr.bf16.mxu1 %v2521_v3  ;;  %2385 = vmatprep.mubr.bf16.mxu0 %v1129_v4 }
  0x78   : > { %2409 = vmatprep.mubr.bf16.mxu1 %v1287_v5 }
  0x79   : > { %2376 = vmatpush3.bf16.msra.mxu0 %v2520_v2 }
  0x7a   : > { %2400 = vmatpush3.bf16.msra.mxu1 %v2521_v3  ;;  %2377 = vmatprep.subr.bf16.mxu0 %v2522_v6 }
  0x7b   : > { %2401 = vmatprep.subr.bf16.mxu1 %v2523_v7 }
  0x7d   : > { %2378 = vmatpush3.bf16.msra.mxu0 %v2522_v6 }
  0x7e   : > { %2402 = vmatpush3.bf16.msra.mxu1 %v2523_v7  ;;  %2379 = vmatprep.subr.bf16.mxu0 %v2524_v8 }
  0x7f   : > { %2403 = vmatprep.subr.bf16.mxu1 %v2525_v9 }
  0x81   : > { %2380 = vmatpush3.bf16.msra.mxu0 %v2524_v8 }
  0x82   : > { %2404 = vmatpush3.bf16.msra.mxu1 %v2525_v9  ;;  %2381 = vmatprep.subr.bf16.mxu0 %v2526_v10 }
  0x83   : > { %2405 = vmatprep.subr.bf16.mxu1 %v2527_v11 }
  0x85   : > { %2382 = vmatpush3.bf16.msra.mxu0 %v2526_v10 }
  0x86   : > { %2406 = vmatpush3.bf16.msra.mxu1 %v2527_v11  ;;  %2383 = vmatprep.subr.bf16.mxu0 %v2528_v12 }
  0x87   : > { %2407 = vmatprep.subr.bf16.mxu1 %v2529_v13 }
  0x89   : > { %2384 = vmatpush3.bf16.msra.mxu0 %v2528_v12 }
  0x8a   : > { %2408 = vmatpush3.bf16.msra.mxu1 %v2529_v13  ;;  %2417 = vmatprep.subr.bf16.mxu0 %v2530_v16 }
  0x8b   : > { %2441 = vmatprep.subr.bf16.mxu1 %v2530_v16 }
  0x8c   : > { %2386 = vmatmul.mubr.bf16.vlgmr.msra.gmra.mxu0 %v1130_v19 }
  0x8d   : > { %2410 = vmatmul.mubr.bf16.vlgmr.msra.gmra.mxu1 %v1288_v22  ;;  %2418 = vmatpush3.bf16.msra.mxu0 %v2530_v16 }
  0x8e   : > { %2449 = vmatpush3.bf16.msra.mxu1 %v2530_v16  ;;  %2419 = vmatprep.subr.bf16.mxu0 %v2531_v25 }
  0x8f   : > { %2442 = vmatprep.subr.bf16.mxu1 %v2531_v25  ;;  %2389 = vmatprep.mubr.bf16.mxu0 %v1131_v26 }
  0x90   : > { %2413 = vmatprep.mubr.bf16.mxu1 %v1289_v27 }
  0x91   : > { %2420 = vmatpush3.bf16.msra.mxu0 %v2531_v25 }
  0x92   : > { %2450 = vmatpush3.bf16.msra.mxu1 %v2531_v25  ;;  %2421 = vmatprep.subr.bf16.mxu0 %v2532_v30 }
  0x93   : > { %2443 = vmatprep.subr.bf16.mxu1 %v2532_v30 }
  0x94   : > { %2390 = vmatmul.mubr.bf16.gmra.mxu0 %v1132_v33 }
  0x95   : > { %2422 = vmatpush3.bf16.msra.mxu0 %v2532_v30  ;;  %2414 = vmatmul.mubr.bf16.gmra.mxu1 %v1290_v36 }
  0x96   : > { %2451 = vmatpush3.bf16.msra.mxu1 %v2532_v30  ;;  %2423 = vmatprep.subr.bf16.mxu0 %v2533_v39 }
  0x97   : > { %2444 = vmatprep.subr.bf16.mxu1 %v2533_v39  ;;  %2433 = vmatprep.mubr.bf16.mxu0 %v1445_v40 }
  0x98   : > { %2437 = vmatprep.mubr.bf16.mxu1 %v1447_v41 }
  0x99   : > { %2424 = vmatpush3.bf16.msra.mxu0 %v2533_v39 }
  0x9a   : > { %2452 = vmatpush3.bf16.msra.mxu1 %v2533_v39  ;;  %2425 = vmatprep.subr.bf16.mxu0 %v2534_v42 }
  0x9b   : > { %2445 = vmatprep.subr.bf16.mxu1 %v2534_v42 }
  0x9d   : > { %2426 = vmatpush3.bf16.msra.mxu0 %v2534_v42 }
  0x9e   : > { %2453 = vmatpush3.bf16.msra.mxu1 %v2534_v42  ;;  %2427 = vmatprep.subr.bf16.mxu0 %v2535_v43 }
  0x9f   : > { %2446 = vmatprep.subr.bf16.mxu1 %v2535_v43 }
  0xa1   : > { %2428 = vmatpush3.bf16.msra.mxu0 %v2535_v43 }
  0xa2   : > { %2454 = vmatpush3.bf16.msra.mxu1 %v2535_v43  ;;  %2429 = vmatprep.subr.bf16.mxu0 %v2536_v44 }
  0xa3   : > { %2447 = vmatprep.subr.bf16.mxu1 %v2536_v44 }
  0xa5   : > { %2430 = vmatpush3.bf16.msra.mxu0 %v2536_v44 }
  0xa6   : > { %2455 = vmatpush3.bf16.msra.mxu1 %v2536_v44  ;;  %2431 = vmatprep.subr.bf16.mxu0 %v2537_v45 }
  0xa7   : > { %2448 = vmatprep.subr.bf16.mxu1 %v2537_v45 }
  0xa9   : > { %2432 = vmatpush3.bf16.msra.mxu0 %v2537_v45 }
  0xaa   : > { %2456 = vmatpush3.bf16.msra.mxu1 %v2537_v45 }
  0xac   : > { %2434 = vmatmul.mubr.bf16.vlgmr.msra.gmra.mxu0 %v1446_v50 }
  0xad   : > { %2438 = vmatmul.mubr.bf16.vlgmr.msra.gmra.mxu1 %v1448_v51 }
  0xec   : > { %v2243_v52 = vpop.f32.mrf.mxu0 }
  0xed   : > { %v2267_v53 = vpop.f32.mrf.mxu1 }
  0xee   : > { %v337_v54 = vpop.f32.mrf.mxu0  ;;  %v459_v44 = vadd.f32 %v2267_v53, %v2243_v52 }
  0xef   : > { %v450_v55 = vpop.f32.mrf.mxu1 }
  0xf0   : > { %v2244_v56 = vpop.f32.mrf.mxu0  ;;  %v451_v45 = vadd.f32 %v450_v55, %v337_v54 }
  0xf1   : > { %v2268_v57 = vpop.f32.mrf.mxu1 }
  0xf2   : > { %v340_v58 = vpop.f32.mrf.mxu0  ;;  %v462_v46 = vadd.f32 %v2268_v57, %v2244_v56 }
  0xf3   : > { %v453_v59 = vpop.f32.mrf.mxu1 }
  0xf4   : > { %v2247_v60 = vpop.f32.mrf.mxu0  ;;  %v454_v50 = vadd.f32 %v453_v59, %v340_v58 }
  0xf5   : > { %v2271_v61 = vpop.f32.mrf.mxu1 }
  0xf6   : > { %v353_v62 = vpop.f32.mrf.mxu0  ;;  %v475_v47 = vadd.f32 %v2271_v61, %v2247_v60 }
  0xf7   : > { %v466_v63 = vpop.f32.mrf.mxu1 }
  0xf8   : > { %v2248_v0 = vpop.f32.mrf.mxu0 }
  0xf9   : > { %v2272_v1 = vpop.f32.mrf.mxu1 }
  0xfa   : > { %v356_v2 = vpop.f32.mrf.mxu0  ;;  %v478_v48 = vadd.f32 %v2272_v1, %v2248_v0 }
  0xfb   : > { %v469_v3 = vpop.f32.mrf.mxu1 }
  0xfc   : > { %v470_v52 = vadd.f32 %v469_v3, %v356_v2 }
 0x10c   : > { %v2291_v4 = vpop.f32.mrf.mxu0 }
 0x10d   : > { %v2315_v5 = vpop.f32.mrf.mxu1  ;;  %v633_v51 = vadd.f32 %v2291_v4, %v459_v44 }
 0x10e   : > { %v600_v6 = vpop.f32.mrf.mxu0 }
 0x10f   : > { %v758_v7 = vpop.f32.mrf.mxu1  ;;  %v791_v61 = vadd.f32 %v2315_v5, %v633_v51 }
 0x110   : > { %v2292_v8 = vpop.f32.mrf.mxu0 }
 0x111   : > { %v2316_v9 = vpop.f32.mrf.mxu1 }
 0x112   : > { %v603_v10 = vpop.f32.mrf.mxu0 }
 0x113   : > { %v761_v11 = vpop.f32.mrf.mxu1  ;;  %v632_v55 = vadd.f32 %v603_v10, %v454_v50 }
 0x114   : > { %v2295_v12 = vpop.f32.mrf.mxu0 }
 0x115   : > { %v2319_v13 = vpop.f32.mrf.mxu1  ;;  %v637_v53 = vadd.f32 %v2295_v12, %v475_v47  ;;  %v790_v44 = vadd.f32 %v761_v11, %v632_v55 }
 0x116   : > { %v616_v14 = vpop.f32.mrf.mxu0 }
 0x117   : > { %v774_v15 = vpop.f32.mrf.mxu1  ;;  %v795_v59 = vadd.f32 %v2319_v13, %v637_v53 }
 0x118   : > { %v2296_v16 = vpop.f32.mrf.mxu0 }
 0x119   : > { %v2320_v17 = vpop.f32.mrf.mxu1  ;;  %v638_v54 = vadd.f32 %v2296_v16, %v478_v48 }
 0x11a   : > { %v619_v18 = vpop.f32.mrf.mxu0 }
 0x11b   : > { %v777_v19 = vpop.f32.mrf.mxu1  ;;  %v636_v57 = vadd.f32 %v619_v18, %v470_v52  ;;  %v796_v4 = vadd.f32 %v2320_v17, %v638_v54 }
 0x12c   : > { %v2339_v20 = vpop.f32.mrf.mxu0 }
 0x12d   : > { %v2363_v21 = vpop.f32.mrf.mxu1 }
 0x12e   : > { %v916_v22 = vpop.f32.mrf.mxu0 }
 0x12f   : > { %v1074_v23 = vpop.f32.mrf.mxu1 }
 0x130   : > { %v2340_v24 = vpop.f32.mrf.mxu0 }
 0x131   : > { %v2364_v25 = vpop.f32.mrf.mxu1 }
 0x132   : > { %v919_v26 = vpop.f32.mrf.mxu0 }
 0x133   : > { %v1077_v27 = vpop.f32.mrf.mxu1  ;;  %v948_v12 = vadd.f32 %v919_v26, %v790_v44 }
 0x134   : > { %v2343_v28 = vpop.f32.mrf.mxu0 }
 0x135   : > { %v2367_v29 = vpop.f32.mrf.mxu1  ;;  %v1106_v17 = vadd.f32 %v1077_v27, %v948_v12 }
 0x136   : > { %v932_v30 = vpop.f32.mrf.mxu0 }
 0x137   : > { %v1090_v31 = vpop.f32.mrf.mxu1 }
 0x138   : > { %v2344_v32 = vpop.f32.mrf.mxu0 }
 0x139   : > { %v2368_v33 = vpop.f32.mrf.mxu1  ;;  %v954_v2 = vadd.f32 %v2344_v32, %v796_v4 }
 0x13a   : > { %v935_v34 = vpop.f32.mrf.mxu0 }
 0x13b   : > { %v1093_v35 = vpop.f32.mrf.mxu1 }
 0x14c   : > { %v2387_v36 = vpop.f32.mrf.mxu0 }
 0x14d   : > { %v2870_v37 = vpop.f32.mrf.mxu1 }
 0x14e   : > { %2897 = vst [vmem:[#allocation2_spill] sm:$0xff] %v2870_v37  ;;  %v1232_v38 = vpop.f32.mrf.mxu0  ;;  %v631_v37 = vadd.f32 %v600_v6, %v451_v45  ;;  %v949_v6 = vadd.f32 %v2339_v20, %v791_v61 }
 0x14f   : > { %v2872_v39 = vpop.f32.mrf.mxu1 }
 0x150   : > { %2898 = vst [vmem:[#allocation3_spill] sm:$0xff] %v2872_v39  ;;  %v2388_v40 = vpop.f32.mrf.mxu0  ;;  %v634_v39 = vadd.f32 %v2292_v8, %v462_v46  ;;  %v789_v0 = vadd.f32 %v758_v7, %v631_v37  ;;  %v1107_v18 = vadd.f32 %v2363_v21, %v949_v6  ;;  %v1112_v37 = vadd.f32 %v2368_v33, %v954_v2 }
 0x151   : > { %v2874_v41 = vpop.f32.mrf.mxu1 }
 0x152   : > { %2899 = vst [vmem:[#allocation4_spill] sm:$0xff] %v2874_v41  ;;  %v1235_v42 = vpop.f32.mrf.mxu0  ;;  %v792_v1 = vadd.f32 %v2316_v9, %v634_v39  ;;  %v947_v45 = vadd.f32 %v916_v22, %v789_v0  ;;  %v1265_v11 = vadd.f32 %v2387_v36, %v1107_v18 }
 0x153   : > { %v2876_v43 = vpop.f32.mrf.mxu1  ;;  %v1264_v39 = vadd.f32 %v1235_v42, %v1106_v17 }
 0x154   : > { %2900 = vst [vmem:[#allocation5_spill] sm:$0xff] %v2876_v43  ;;  %v2391_v49 = vpop.f32.mrf.mxu0  ;;  %v467_v43 = vadd.f32 %v466_v63, %v353_v62  ;;  %v950_v8 = vadd.f32 %v2340_v24, %v792_v1  ;;  %v794_v62 = vadd.f32 %v777_v19, %v636_v57  ;;  %v953_v63 = vadd.f32 %v2343_v28, %v795_v59 }
 0x155   : > { %v2415_v41 = vpop.f32.mrf.mxu1  ;;  %v1105_v5 = vadd.f32 %v1074_v23, %v947_v45 }
 0x156   : > { %v635_v56 = vadd.f32 %v616_v14, %v467_v43  ;;  %v1248_v60 = vpop.f32.mrf.mxu0  ;;  %v952_v16 = vadd.f32 %v935_v34, %v794_v62  ;;  %v1108_v7 = vadd.f32 %v2364_v25, %v950_v8  ;;  %v1111_v9 = vadd.f32 %v2367_v29, %v953_v63  ;;  %v2901_v25 = vld [vmem:[#allocation2_spill] sm:$0xff] }
 0x157   : > { %v1406_v58 = vpop.f32.mrf.mxu1  ;;  %v1263_v20 = vadd.f32 %v1232_v38, %v1105_v5  ;;  %v1423_v29 = vadd.f32 %v2901_v25, %v1265_v11  ;;  %v2902_v33 = vld [vmem:[#allocation3_spill] sm:$0xff] }
 0x158   : > { %v793_v46 = vadd.f32 %v774_v15, %v635_v56  ;;  %v2392_v3 = vpop.f32.mrf.mxu0  ;;  %v1266_v22 = vadd.f32 %v2388_v40, %v1108_v7  ;;  %v1110_v24 = vadd.f32 %v1093_v35, %v952_v16  ;;  %v1269_v28 = vadd.f32 %v2391_v49, %v1111_v9 }
 0x159   : > { %v2416_v10 = vpop.f32.mrf.mxu1  ;;  %v1270_v32 = vadd.f32 %v2392_v3, %v1112_v37  ;;  %v1421_v43 = vadd.f32 %v2902_v33, %v1263_v20  ;;  %v2903_v27 = vld [vmem:[#allocation4_spill] sm:$0xff] }
 0x15a   : > { %v951_v14 = vadd.f32 %v932_v30, %v793_v46  ;;  %v1251_v13 = vpop.f32.mrf.mxu0  ;;  %v1424_v36 = vadd.f32 %v2903_v27, %v1266_v22  ;;  %v1427_v40 = vadd.f32 %v2415_v41, %v1269_v28 }
 0x15b   : > { %v1409_v15 = vpop.f32.mrf.mxu1  ;;  %v1268_v21 = vadd.f32 %v1251_v13, %v1110_v24  ;;  %v1428_v47 = vadd.f32 %v2416_v10, %v1270_v32  ;;  %v2904_v35 = vld [vmem:[#allocation5_spill] sm:$0xff] }
 0x15c   : > { %v1109_v19 = vadd.f32 %v1090_v31, %v951_v14  ;;  %v1422_v48 = vadd.f32 %v2904_v35, %v1264_v39 }
 0x15d   : > { %v1426_v53 = vadd.f32 %v1409_v15, %v1268_v21 }
 0x15e   : > { %v1267_v34 = vadd.f32 %v1248_v60, %v1109_v19 }
 0x160   : > { %v1425_v52 = vadd.f32 %v1406_v58, %v1267_v34 }
 0x16c   : > { %v2435_v26 = vpop.f32.mrf.mxu0 }
 0x16d   : > { %v2439_v30 = vpop.f32.mrf.mxu1  ;;  %v1581_v49 = vadd.f32 %v2435_v26, %v1423_v29 }
 0x16e   : > { %v1548_v23 = vpop.f32.mrf.mxu0  ;;  %v1585_v54 = vadd.f32 %v2439_v30, %v1427_v40 }
 0x16f   : > { %v1564_v38 = vpop.f32.mrf.mxu1  ;;  %v1579_v50 = vadd.f32 %v1548_v23, %v1421_v43  ;;  %v1643_v45 = vmul.f32 %v1581_v49, %v1581_v49 }
 0x170   : > { %v2436_v31 = vpop.f32.mrf.mxu0  ;;  %v1583_v61 = vadd.f32 %v1564_v38, %v1425_v52  ;;  %v1647_v5 = vmul.f32 %v1585_v54, %v1585_v54 }
 0x171   : > { %v1582_v42 = vadd.f32 %v2436_v31, %v1424_v36  ;;  %v2440_v51 = vpop.f32.mrf.mxu1  ;;  %v1641_v59 = vmul.f32 %v1579_v50, %v1579_v50 }
 0x172   : > { %v1586_v55 = vadd.f32 %v2440_v51, %v1428_v47  ;;  %v1551_v56 = vpop.f32.mrf.mxu0  ;;  %v1645_v3 = vmul.f32 %v1583_v61, %v1583_v61 }
 0x173   : > { %v2102_v57 = vpack.c.bf16 %v1582_v42, %v1581_v49  ;;  %v1580_v60 = vadd.f32 %v1551_v56, %v1422_v48  ;;  %v1567_v41 = vpop.f32.mrf.mxu1  ;;  %v1644_v62 = vmul.f32 %v1582_v42, %v1582_v42 }
 0x174   : > { %v2112_v0 = vpack.c.bf16 %v1586_v55, %v1585_v54  ;;  %v1584_v1 = vadd.f32 %v1567_v41, %v1426_v53  ;;  %v1648_v37 = vmul.f32 %v1586_v55, %v1586_v55 }
 0x175   : > { %2114 = vst [vmem:[%s177_s19 + $0x8] sm:$0xff] %v2102_v57   ;;  %v2097_v4 = vpack.c.bf16 %v1580_v60, %v1579_v50  ;;  %v1627_v44 = vadd.f32 %v1580_v60, %v1579_v50  ;;  %v1642_v6 = vmul.f32 %v1580_v60, %v1580_v60 }
 0x176   : > { %2116 = vst [vmem:[%s177_s19 + $0x18] sm:$0xff] %v2112_v0   ;;  %v2107_v58 = vpack.c.bf16 %v1584_v1, %v1583_v61  ;;  %v1646_v16 = vmul.f32 %v1584_v1, %v1584_v1 }
 0x177   : > { %2098 = vst [vmem:[%s177_s19] sm:$0xff] %v2097_v4   ;;  %v1628_v8 = vadd.f32 %v1627_v44, %v1581_v49  ;;  %v1649_v46 = vadd.f32 %v1642_v6, %v1641_v59 }
 0x178   : > { %2115 = vst [vmem:[%s177_s19 + $0x10] sm:$0xff] %v2107_v58  }
 0x179   : > { %v1650_v63 = vadd.f32 %v1649_v46, %v1643_v45  ;;  %v1629_v2 = vadd.f32 %v1628_v8, %v1582_v42 }
 0x17b   : > { %v1630_v12 = vadd.f32 %v1629_v2, %v1583_v61  ;;  %v1651_v10 = vadd.f32 %v1650_v63, %v1644_v62 }
 0x17d   : > { %v1631_v14 = vadd.f32 %v1630_v12, %v1584_v1  ;;  %v1652_v18 = vadd.f32 %v1651_v10, %v1645_v3 }
 0x17f   : > { %v1632_v7 = vadd.f32 %v1631_v14, %v1585_v54  ;;  %v1653_v9 = vadd.f32 %v1652_v18, %v1646_v16 }
 0x181   : > { %v1633_v13 = vadd.f32 %v1632_v7, %v1586_v55  ;;  %v1654_v17 = vadd.f32 %v1653_v9, %v1647_v5 }
 0x183   : > { %v1634_v11 = vrot.slane %v1633_v13, 4  ;;  %v1655_v20 = vadd.f32 %v1654_v17, %v1648_v37 }
 0x185   : > { %v1635_v22 = vadd.f32 %v1634_v11, %v1633_v13  ;;  %v1656_v15 = vrot.slane %v1655_v20, 4 }
 0x187   : > { %v1636_v19 = vrot.slane %v1635_v22, 2  ;;  %v1657_v24 = vadd.f32 %v1656_v15, %v1655_v20 }
 0x189   : > { %v1637_v28 = vadd.f32 %v1636_v19, %v1635_v22  ;;  %v1658_v32 = vrot.slane %v1657_v24, 2 }
 0x18b   : > { %v1638_v26 = vrot.slane %v1637_v28, 1  ;;  %v1659_v39 = vadd.f32 %v1658_v32, %v1657_v24 }
 0x18d   : > { %v1639_v30 = vadd.f32 %v1638_v26, %v1637_v28  ;;  %v1660_v34 = vrot.slane %v1659_v39, 1 }
 0x18f   : > { %1640 = vst [vmem:[%s181_s23] sm:$0x1] %v1639_v30  ;;  %v1661_v21 = vadd.f32 %v1660_v34, %v1659_v39 }
 0x191   : > { %1662 = vst [vmem:[%s181_s23 + $0x1] sm:$0x1] %v1661_v21 }
 0x192 PF: > { %s14_s12 = sadd.s32 1, %s2544_s12  }
 0x193   : > { %p11_p4 = scmp.ge.s32.totalorder %s14_s12, 4  }
 0x195   :  { %13 = sbr.rel (!%p11_p4) target bundleno = 1 (0x1), region = 149 }

</bundles_post_ra>
